<compile_context>
chip_gen: v7x
topology: tpu7x:2x2x1
jax: 0.10.0
libtpu: 0.0.40
codegen_flags: <defaults>
</compile_context>

<pallas_src>
import jax
import jax.numpy as jnp
from jax.experimental import pallas as pl
from jax.experimental.pallas import tpu as pltpu


HIDDEN = 256
LATENT = 64


def _dae_fused_kernel(x_ref, w1_ref, b1_ref, w2_ref, b2_ref,
                      w3_ref, b3_ref, w4_ref, b4_ref, o_ref):
    """One batch tile of the fused DAE forward.

    x_ref:  [TM, D]      input activation tile (streamed)
    wN_ref: [Din, Dout]  bf16 weights (full arrays, VMEM-resident)
    bN_ref: [1, Dout]    f32 biases   (full arrays, VMEM-resident)
    o_ref:  [TM, D]      output tile (streamed)
    """

    def layer(a, w_ref, b_ref, act):
        # bf16 MXU inputs, f32 accumulation; bias/ReLU/sigmoid stay in f32
        # (v5e VPU/EUP have no bf16 path).
        acc = jnp.dot(a.astype(w_ref.dtype), w_ref[...],
                      preferred_element_type=jnp.float32)
        acc = acc + b_ref[...]
        if act == "relu":
            return jnp.maximum(acc, 0.0)
        if act == "sigmoid":
            return jax.nn.sigmoid(acc)
        return acc

    # NOTE: the 64-wide latent (enc2/dec1) is intentionally left unpadded:
    # those layers are <6% of total FLOPs and z never leaves VMEM, so MXU
    # underutilization there does not affect wall time.
    h = layer(x_ref[...], w1_ref, b1_ref, "relu")       # [TM, 256]
    z = layer(h, w2_ref, b2_ref, "relu")                # [TM, 64]
    h2 = layer(z, w3_ref, b3_ref, "relu")               # [TM, 256]
    y = layer(h2, w4_ref, b4_ref, "sigmoid")            # [TM, D]
    o_ref[...] = y.astype(o_ref.dtype)


def dae_forward_flat(params, x_flat, *, tm=512, out_dtype=None):
    """Batch-tiled fused Pallas forward on flattened input.

    x_flat: [B, D] -> [B, D].
    tm: target rows per grid step (multiple of 128 recommended for large B).
    out_dtype: output dtype at the pallas_call boundary (defaults to input
      dtype).  Pass jnp.bfloat16 to halve output HBM traffic at large B;
      accumulation / activation math inside stays f32 either way.
    """
    B, D = x_flat.shape
    out_dtype = x_flat.dtype if out_dtype is None else jnp.dtype(out_dtype)

    (w1, b1) = params["enc1"]
    (w2, b2) = params["enc2"]
    (w3, b3) = params["dec1"]
    (w4, b4) = params["dec2"]
    weights = (w1, w2, w3, w4)
    biases = (b1, b2, b3, b4)

    # Batch tile: full (tiny) batch in one grid step when B < tm, otherwise
    # tm rows per step with the batch zero-padded to a multiple of tm.
    tm_eff = tm if B >= tm else B
    pad = (-B) % tm_eff
    if pad:
        x_flat = jnp.pad(x_flat, ((0, pad), (0, 0)))
    b_pad = B + pad
    num_tiles = b_pad // tm_eff

    # VMEM budget: double-buffered weights + double-buffered x/o tiles +
    # f32 intermediates, with 1.5x headroom; capped under v7x's 64 MiB.
    bytes_params = (sum(int(w.size) * w.dtype.itemsize for w in weights)
                    + sum(int(b.size) * b.dtype.itemsize for b in biases))
    bytes_io_tile = tm_eff * D * (x_flat.dtype.itemsize + out_dtype.itemsize)
    bytes_interm = tm_eff * (HIDDEN + LATENT + HIDDEN) * 4
    vmem_needed = 2 * bytes_params + 2 * bytes_io_tile + bytes_interm
    vmem_limit = int(min(max(int(vmem_needed * 1.5), 16 * 1024 * 1024),
                         56 * 1024 * 1024))

    flops = 2 * B * sum(w.shape[0] * w.shape[1] for w in weights)
    bytes_accessed = (B * D * x_flat.dtype.itemsize
                      + B * D * out_dtype.itemsize
                      + bytes_params)

    # Streamed activation tiles over the batch axis.
    x_spec = pl.BlockSpec((tm_eff, D), lambda i: (i, 0))
    o_spec = pl.BlockSpec((tm_eff, D), lambda i: (i, 0))

    def const_spec(arr):
        # Full-array block with a constant index_map: fetched once per call,
        # stays VMEM-resident across every batch tile.
        return pl.BlockSpec(arr.shape, lambda i: (0,) * arr.ndim)

    y = pl.pallas_call(
        _dae_fused_kernel,
        out_shape=jax.ShapeDtypeStruct((b_pad, D), out_dtype),
        grid=(num_tiles,),
        in_specs=[x_spec,
                  const_spec(w1), const_spec(b1),
                  const_spec(w2), const_spec(b2),
                  const_spec(w3), const_spec(b3),
                  const_spec(w4), const_spec(b4)],
        out_specs=o_spec,
        compiler_params=pltpu.CompilerParams(
            # batch tiles are independent -> shard across v7x's 2 TCs
            dimension_semantics=("parallel",),
            vmem_limit_bytes=vmem_limit),
        cost_estimate=pl.CostEstimate(
            flops=flops,
            transcendentals=2 * B * D,   # sigmoid ~ exp + reciprocal per elem
            bytes_accessed=bytes_accessed),
    )(x_flat, w1, b1, w2, b2, w3, b3, w4, b4)

    return y[:B] if pad else y


def init_linear_params(key, fan_in, fan_out, weight_dtype=jnp.bfloat16):
    """PyTorch nn.Linear default init: U(-1/sqrt(fan_in), 1/sqrt(fan_in)).

    Weight stored as [D_in, D_out] (transpose of torch's [out, in]) so the
    kernel computes x @ W directly; weight cast to bf16, bias kept f32
    [1, D_out].
    """
    kw, kb = jax.random.split(key)
    bound = 1.0 / jnp.sqrt(jnp.float32(fan_in))
    w = jax.random.uniform(kw, (fan_in, fan_out), jnp.float32, -bound, bound)
    b = jax.random.uniform(kb, (1, fan_out), jnp.float32, -bound, bound)
    return w.astype(weight_dtype), b


def make_autoencoder3_params(key, d_in, hidden=HIDDEN, latent=LATENT):
    keys = jax.random.split(key, 4)
    return {
        "enc1": init_linear_params(keys[0], d_in, hidden),
        "enc2": init_linear_params(keys[1], hidden, latent),
        "dec1": init_linear_params(keys[2], latent, hidden),
        "dec2": init_linear_params(keys[3], hidden, d_in),
    }


def autoencoder3_forward(params, x_nchw):
    """Autoencoder3.forward: decoded = decoder(encoder(x))."""
    B, C, H, W = x_nchw.shape
    x = x_nchw.reshape(B, C * H * W)        # == torch x.view(B, -1)
    y = dae_forward_flat(params, x)
    return y.reshape(B, C, H, W)


def _reference_forward(params, x_nchw):
    """Pure-JAX reference (same bf16-weight / f32-accumulate math)."""
    B, C, H, W = x_nchw.shape
    a = x_nchw.reshape(B, C * H * W)

    def lin(a_f32, wb, act):
        w, b = wb
        y = jnp.dot(a_f32.astype(w.dtype), w,
                    preferred_element_type=jnp.float32) + b
        if act == "relu":
            return jnp.maximum(y, 0.0)
        if act == "sigmoid":
            return jax.nn.sigmoid(y)
        return y

    h = lin(a, params["enc1"], "relu")
    z = lin(h, params["enc2"], "relu")
    h2 = lin(z, params["dec1"], "relu")
    y = lin(h2, params["dec2"], "sigmoid")
    return y.reshape(B, C, H, W)


if __name__ == "__main__":
    key = jax.random.PRNGKey(0)
    k_x, k_p = jax.random.split(key)

    B, C, H, W = 2, 4, 16, 16               # small NCHW image batch
    D = C * H * W                            # 1024
    x = jax.random.uniform(k_x, (B, C, H, W), jnp.float32)   # DAE inputs in [0, 1]

    params = make_autoencoder3_params(k_p, D, hidden=HIDDEN, latent=LATENT)

    out = jax.jit(autoencoder3_forward)(params, x)
    out = jax.block_until_ready(out)

    ref = _reference_forward(params, x)
    assert out.shape == (B, C, H, W)
    assert jnp.allclose(out, ref, atol=2e-3, rtol=2e-3), "mismatch vs reference"

    print("KERNEL_OK")
</pallas_src>

<mosaic_0001>
module attributes {stable_mosaic.version = 11 : i64} {
  func.func @_dae_fused_kernel(%arg0: i32, %arg1: memref<2x1024xf32, #tpu.memory_space<vmem>>, %arg2: memref<1024x256xbf16, #tpu.memory_space<vmem>>, %arg3: memref<1x256xf32, #tpu.memory_space<vmem>>, %arg4: memref<256x64xbf16, #tpu.memory_space<vmem>>, %arg5: memref<1x64xf32, #tpu.memory_space<vmem>>, %arg6: memref<64x256xbf16, #tpu.memory_space<vmem>>, %arg7: memref<1x256xf32, #tpu.memory_space<vmem>>, %arg8: memref<256x1024xbf16, #tpu.memory_space<vmem>>, %arg9: memref<1x1024xf32, #tpu.memory_space<vmem>>, %arg10: memref<2x1024xf32, #tpu.memory_space<vmem>>) attributes {dimension_semantics = [#tpu.dimension_semantics<parallel>], iteration_bounds = array<i64: 1>, scalar_prefetch = 0 : i64, scratch_operands = 0 : i64, tpu.core_type = #tpu.core_type<tc>, window_params = [{transform_indices = @transform_0, window_bounds = array<i64: 2, 1024>}, {pipeline_mode = #tpu.pipeline_mode<synchronous>, transform_indices = @transform_1, window_bounds = array<i64: 1024, 256>}, {pipeline_mode = #tpu.pipeline_mode<synchronous>, transform_indices = @transform_2, window_bounds = array<i64: 1, 256>}, {pipeline_mode = #tpu.pipeline_mode<synchronous>, transform_indices = @transform_3, window_bounds = array<i64: 256, 64>}, {pipeline_mode = #tpu.pipeline_mode<synchronous>, transform_indices = @transform_4, window_bounds = array<i64: 1, 64>}, {pipeline_mode = #tpu.pipeline_mode<synchronous>, transform_indices = @transform_5, window_bounds = array<i64: 64, 256>}, {pipeline_mode = #tpu.pipeline_mode<synchronous>, transform_indices = @transform_6, window_bounds = array<i64: 1, 256>}, {pipeline_mode = #tpu.pipeline_mode<synchronous>, transform_indices = @transform_7, window_bounds = array<i64: 256, 1024>}, {pipeline_mode = #tpu.pipeline_mode<synchronous>, transform_indices = @transform_8, window_bounds = array<i64: 1, 1024>}, {transform_indices = @transform_9, window_bounds = array<i64: 2, 1024>}]} {
    %c0 = arith.constant 0 : index
    %c0_0 = arith.constant 0 : index
    %0 = vector.load %arg1[%c0, %c0_0] : memref<2x1024xf32, #tpu.memory_space<vmem>>, vector<2x1024xf32>
    %1 = arith.truncf %0 : vector<2x1024xf32> to vector<2x1024xbf16>
    %c0_1 = arith.constant 0 : index
    %c0_2 = arith.constant 0 : index
    %2 = vector.load %arg2[%c0_1, %c0_2] : memref<1024x256xbf16, #tpu.memory_space<vmem>>, vector<1024x256xbf16>
    %cst = arith.constant dense<0.000000e+00> : vector<2x256xf32>
    %3 = tpu.matmul %1, %2, %cst {dimension_numbers = #tpu.dot_dimension_numbers<[1], [0], [0], [1], [0, 0, 1, 1], [], []>} : vector<2x1024xbf16>, vector<1024x256xbf16>, vector<2x256xf32> -> vector<2x256xf32>
    %c0_3 = arith.constant 0 : index
    %c0_4 = arith.constant 0 : index
    %4 = vector.load %arg3[%c0_3, %c0_4] : memref<1x256xf32, #tpu.memory_space<vmem>>, vector<1x256xf32>
    %5 = vector.broadcast %4 : vector<1x256xf32> to vector<2x256xf32>
    %6 = arith.addf %3, %5 : vector<2x256xf32>
    %cst_5 = arith.constant 0.000000e+00 : f32
    %7 = vector.broadcast %cst_5 : f32 to vector<2x256xf32>
    %8 = arith.maximumf %6, %7 : vector<2x256xf32>
    %9 = arith.truncf %8 : vector<2x256xf32> to vector<2x256xbf16>
    %c0_6 = arith.constant 0 : index
    %c0_7 = arith.constant 0 : index
    %10 = vector.load %arg4[%c0_6, %c0_7] : memref<256x64xbf16, #tpu.memory_space<vmem>>, vector<256x64xbf16>
    %cst_8 = arith.constant dense<0.000000e+00> : vector<2x64xf32>
    %11 = tpu.matmul %9, %10, %cst_8 {dimension_numbers = #tpu.dot_dimension_numbers<[1], [0], [0], [1], [0, 0, 1, 1], [], []>} : vector<2x256xbf16>, vector<256x64xbf16>, vector<2x64xf32> -> vector<2x64xf32>
    %c0_9 = arith.constant 0 : index
    %c0_10 = arith.constant 0 : index
    %12 = vector.load %arg5[%c0_9, %c0_10] : memref<1x64xf32, #tpu.memory_space<vmem>>, vector<1x64xf32>
    %13 = vector.broadcast %12 : vector<1x64xf32> to vector<2x64xf32>
    %14 = arith.addf %11, %13 : vector<2x64xf32>
    %cst_11 = arith.constant 0.000000e+00 : f32
    %15 = vector.broadcast %cst_11 : f32 to vector<2x64xf32>
    %16 = arith.maximumf %14, %15 : vector<2x64xf32>
    %17 = arith.truncf %16 : vector<2x64xf32> to vector<2x64xbf16>
    %c0_12 = arith.constant 0 : index
    %c0_13 = arith.constant 0 : index
    %18 = vector.load %arg6[%c0_12, %c0_13] : memref<64x256xbf16, #tpu.memory_space<vmem>>, vector<64x256xbf16>
    %cst_14 = arith.constant dense<0.000000e+00> : vector<2x256xf32>
    %19 = tpu.matmul %17, %18, %cst_14 {dimension_numbers = #tpu.dot_dimension_numbers<[1], [0], [0], [1], [0, 0, 1, 1], [], []>} : vector<2x64xbf16>, vector<64x256xbf16>, vector<2x256xf32> -> vector<2x256xf32>
    %c0_15 = arith.constant 0 : index
    %c0_16 = arith.constant 0 : index
    %20 = vector.load %arg7[%c0_15, %c0_16] : memref<1x256xf32, #tpu.memory_space<vmem>>, vector<1x256xf32>
    %21 = vector.broadcast %20 : vector<1x256xf32> to vector<2x256xf32>
    %22 = arith.addf %19, %21 : vector<2x256xf32>
    %cst_17 = arith.constant 0.000000e+00 : f32
    %23 = vector.broadcast %cst_17 : f32 to vector<2x256xf32>
    %24 = arith.maximumf %22, %23 : vector<2x256xf32>
    %25 = arith.truncf %24 : vector<2x256xf32> to vector<2x256xbf16>
    %c0_18 = arith.constant 0 : index
    %c0_19 = arith.constant 0 : index
    %26 = vector.load %arg8[%c0_18, %c0_19] : memref<256x1024xbf16, #tpu.memory_space<vmem>>, vector<256x1024xbf16>
    %cst_20 = arith.constant dense<0.000000e+00> : vector<2x1024xf32>
    %27 = tpu.matmul %25, %26, %cst_20 {dimension_numbers = #tpu.dot_dimension_numbers<[1], [0], [0], [1], [0, 0, 1, 1], [], []>} : vector<2x256xbf16>, vector<256x1024xbf16>, vector<2x1024xf32> -> vector<2x1024xf32>
    %c0_21 = arith.constant 0 : index
    %c0_22 = arith.constant 0 : index
    %28 = vector.load %arg9[%c0_21, %c0_22] : memref<1x1024xf32, #tpu.memory_space<vmem>>, vector<1x1024xf32>
    %29 = vector.broadcast %28 : vector<1x1024xf32> to vector<2x1024xf32>
    %30 = arith.addf %27, %29 : vector<2x1024xf32>
    %31 = arith.negf %30 : vector<2x1024xf32>
    %32 = math.exp %31 : vector<2x1024xf32>
    %cst_23 = arith.constant 1.000000e+00 : f32
    %33 = vector.broadcast %cst_23 : f32 to vector<2x1024xf32>
    %34 = arith.addf %33, %32 : vector<2x1024xf32>
    %35 = arith.divf %33, %34 : vector<2x1024xf32>
    %c0_24 = arith.constant 0 : index
    %c0_25 = arith.constant 0 : index
    %36 = vector.load %arg10[%c0_24, %c0_25] : memref<2x1024xf32, #tpu.memory_space<vmem>>, vector<2x1024xf32>
    tpu.vector_store %arg10[%c0_24, %c0_25], %35 {strides = array<i32>} : memref<2x1024xf32, #tpu.memory_space<vmem>>, vector<2x1024xf32>,
    return
  }
  func.func @transform_0(%arg0: i32) -> (i32, i32) {
    %c0_i32 = arith.constant 0 : i32
    %c0_i32_0 = arith.constant 0 : i32
    return %arg0, %c0_i32 : i32, i32
  }
  func.func @transform_1(%arg0: i32) -> (i32, i32) {
    %c0_i32 = arith.constant 0 : i32
    %c0_i32_0 = arith.constant 0 : i32
    %c0_i32_1 = arith.constant 0 : i32
    return %c0_i32, %c0_i32_0 : i32, i32
  }
  func.func @transform_2(%arg0: i32) -> (i32, i32) {
    %c0_i32 = arith.constant 0 : i32
    %c0_i32_0 = arith.constant 0 : i32
    %c0_i32_1 = arith.constant 0 : i32
    return %c0_i32, %c0_i32_0 : i32, i32
  }
  func.func @transform_3(%arg0: i32) -> (i32, i32) {
    %c0_i32 = arith.constant 0 : i32
    %c0_i32_0 = arith.constant 0 : i32
    %c0_i32_1 = arith.constant 0 : i32
    return %c0_i32, %c0_i32_0 : i32, i32
  }
  func.func @transform_4(%arg0: i32) -> (i32, i32) {
    %c0_i32 = arith.constant 0 : i32
    %c0_i32_0 = arith.constant 0 : i32
    %c0_i32_1 = arith.constant 0 : i32
    return %c0_i32, %c0_i32_0 : i32, i32
  }
  func.func @transform_5(%arg0: i32) -> (i32, i32) {
    %c0_i32 = arith.constant 0 : i32
    %c0_i32_0 = arith.constant 0 : i32
    %c0_i32_1 = arith.constant 0 : i32
    return %c0_i32, %c0_i32_0 : i32, i32
  }
  func.func @transform_6(%arg0: i32) -> (i32, i32) {
    %c0_i32 = arith.constant 0 : i32
    %c0_i32_0 = arith.constant 0 : i32
    %c0_i32_1 = arith.constant 0 : i32
    return %c0_i32, %c0_i32_0 : i32, i32
  }
  func.func @transform_7(%arg0: i32) -> (i32, i32) {
    %c0_i32 = arith.constant 0 : i32
    %c0_i32_0 = arith.constant 0 : i32
    %c0_i32_1 = arith.constant 0 : i32
    return %c0_i32, %c0_i32_0 : i32, i32
  }
  func.func @transform_8(%arg0: i32) -> (i32, i32) {
    %c0_i32 = arith.constant 0 : i32
    %c0_i32_0 = arith.constant 0 : i32
    %c0_i32_1 = arith.constant 0 : i32
    return %c0_i32, %c0_i32_0 : i32, i32
  }
  func.func @transform_9(%arg0: i32) -> (i32, i32) {
    %c0_i32 = arith.constant 0 : i32
    %c0_i32_0 = arith.constant 0 : i32
    return %arg0, %c0_i32 : i32, i32
  }
}

</mosaic_0001>

<bundles_post_ra>
// kernel: autoencoder3_forward.1
= control target key start
LH: loop header
LB: loop body
LE: loop exit
PB: predicated region body
PF: predicated region fallthrough
CT: control target
= control target key end

     0   :  { %14 = vsyncpa [#allocation3], 0  ;;  %s3313_s0 = inlined_call_operand.vmem [shape: f32[2,1024], index: 0, kind: input, shape index: {}]   ;;  %s3314_s1 = inlined_call_operand.hbm [shape: bf16[1024,256], index: 1, kind: input, shape index: {}]   ;;  %s3315_s2 = inlined_call_operand.vmem [shape: f32[1,256], index: 2, kind: input, shape index: {}]   ;;  %s3316_s3 = inlined_call_operand.vmem [shape: bf16[256,64], index: 3, kind: input, shape index: {}]   ;;  %s3317_s4 = inlined_call_operand.vmem [shape: f32[1,64], index: 4, kind: input, shape index: {}]   ;;  %s3318_s5 = inlined_call_operand.vmem [shape: bf16[64,256], index: 5, kind: input, shape index: {}]   ;;  %s3319_s6 = inlined_call_operand.vmem [shape: f32[1,256], index: 6, kind: input, shape index: {}]   ;;  %s3320_s7 = inlined_call_operand.hbm [shape: bf16[256,1024], index: 7, kind: input, shape index: {}]   ;;  %s3321_s8 = inlined_call_operand.vmem [shape: f32[1,1024], index: 8, kind: input, shape index: {}]   ;;  %s3322_s9 = inlined_call_operand.vmem [shape: f32[2,1024], index: 9, kind: output, shape index: {}]  }
   0x1   :  { %15 = vsyncpa [#allocation5], 0  ;;  %s3059_s30 = smov [#allocation2]   ;;  %s3011_s13 = scalar_lea.hbm %s3314_s1, 16384 }
   0x2   :  { %s23_s10 = sshll.u32 %s3059_s30, 4  ;;  %p3012_p0 = scmp.ne.s32.totalorder %s3314_s1, %s3011_s13  ;;  %s24_s10 = int_to_ptr.vmem [resolvable:$true] %s23_s10 }
   0x3   :  { %p3015_p1 = scmp.lt.u32.totalorder %s3011_s13, %s3314_s1 }
   0x5   :  { %p3017_p2 = pnand %p3015_p1, %p3012_p0 }
   0x7   :  { %3020 = shalt.err (!%p3017_p2)
}
   0x8   :  { %s3021_s18 = scalar_lea.vmem %s24_s10, 16384  ;;  %p3026_p4 = scmp.lt.s32.totalorder %s24_s10, %s24_s10 }
   0x9   :  { %p3022_p3 = scmp.ne.s32.totalorder %s24_s10, %s3021_s18  ;;  %p3027_p5 = scmp.lt.s32.totalorder %s3021_s18, %s3021_s18 }
   0xb   :  { %p3028_p6 = por %p3027_p5, %p3026_p4 }
   0xd   :  { %p3029_p7 = pnand %p3028_p6, %p3022_p3 }
   0xf   :  { %3032 = shalt.err (!%p3029_p7)
}
  0x10   :  { %s3060_s19 = smov 128   ;;  %s3061_s20 = smov 8  }
  0x11   :  { %29 = dma.hbm_to_vmem [thread:$0]  %s3314_s1, 16384, %s24_s10, [#allocation3], %s3060_s19, %s3060_s19, %s3061_s20  }
  0x12   :  { %s3062_s23 = smov [#allocation4]   ;;  %s3033_s27 = scalar_lea.hbm %s3320_s7, 16384 }
  0x13   :  { %s45_s24 = sshll.u32 %s3062_s23, 4  ;;  %p3034_p8 = scmp.ne.s32.totalorder %s3320_s7, %s3033_s27  ;;  %s46_s24 = int_to_ptr.vmem [resolvable:$true] %s45_s24 }
  0x14   :  { %p3037_p9 = scmp.lt.u32.totalorder %s3033_s27, %s3320_s7 }
  0x16   :  { %p3039_p10 = pnand %p3037_p9, %p3034_p8 }
  0x18   :  { %3042 = shalt.err (!%p3039_p10)
}
  0x19   :  { %s3043_s12 = scalar_lea.vmem %s46_s24, 16384  ;;  %p3048_p12 = scmp.lt.s32.totalorder %s46_s24, %s46_s24 }
  0x1a   :  { %p3044_p11 = scmp.ne.s32.totalorder %s46_s24, %s3043_s12  ;;  %p3049_p13 = scmp.lt.s32.totalorder %s3043_s12, %s3043_s12 }
  0x1c   :  { %p3050_p0 = por %p3049_p13, %p3048_p12 }
  0x1e   :  { %p3051_p1 = pnand %p3050_p0, %p3044_p11 }
  0x20   :  { %3054 = shalt.err (!%p3051_p1)
}
  0x21   :  { %s3063_s1 = smov 512   ;;  %s3064_s10 = smov 32  }
  0x22   :  { %51 = dma.hbm_to_vmem [thread:$0]  %s3320_s7, 16384, %s46_s24, [#allocation5], %s3063_s1, %s3063_s1, %s3064_s10  }
  0x23   :  { %3055 = dma.done.wait [#allocation3], 16384  }
  0x24   :  { %3056 = vsyncadd [#allocation3], 4294950912 }
  0x25   :  { %3057 = dma.done.wait [#allocation5], 16384  }
  0x26   :  { %3058 = vsyncadd [#allocation5], 4294950912  ;;  %v2757_v0 = vld [vmem:[#allocation2 + $0x4] ss:$8 sps:$4 sm:$0xff]   ;;  %v2759_v1 = vld [vmem:[#allocation2] ss:$8 sps:$4 sm:$0xff]   ;;  %v69_v9 = vlaneseq }
  0x27   :  { %895 = vmatprep.subr.bf16.mxu0 %v2757_v0  ;;  %v2760_v2 = vld [vmem:[#allocation2 + $0x14] ss:$8 sps:$4 sm:$0xff]   ;;  %v2762_v3 = vld [vmem:[#allocation2 + $0x10] ss:$8 sps:$4 sm:$0xff]   ;;  %v2763_v4 = vld [vmem:[#allocation2 + $0x24] ss:$8 sps:$4 sm:$0xff]  }
  0x28   :  { %896 = vmatpush1.bf16.msra.mxu0 %v2759_v1  ;;  %v2765_v5 = vld [vmem:[#allocation2 + $0x20] ss:$8 sps:$4 sm:$0xff]   ;;  %v2766_v6 = vld [vmem:[#allocation2 + $0x34] ss:$8 sps:$4 sm:$0xff]   ;;  %v3065_v7 = vmov 1983009808  }
  0x29   :  { %897 = vmatprep.subr.bf16.mxu0 %v2760_v2  ;;  %v67_v8 = vunpack.c.l.s4 %v3065_v7  ;;  %v2768_v10 = vld [vmem:[#allocation2 + $0x30] ss:$8 sps:$4 sm:$0xff]   ;;  %v2769_v11 = vld [vmem:[#allocation2 + $0x44] ss:$8 sps:$4 sm:$0xff]   ;;  %v3141_v13 = vshrl.u32 %v69_v9, 7  ;;  %vm1300_vm0 = vcmask 523264  }
  0x2a   :  { %v2771_v14 = vld [vmem:[#allocation2 + $0x40] ss:$8 sps:$4 sm:$0xff]   ;;  %v2772_v15 = vld [vmem:[#allocation2 + $0x54] ss:$8 sps:$4 sm:$0xff]   ;;  %v2774_v17 = vld [vmem:[#allocation2 + $0x50] ss:$8 sps:$4 sm:$0xff]  }
  0x2b   :  { %v68_v12 = vunpack.c.0.s8 %v67_v8  ;;  %v2775_v18 = vld [vmem:[#allocation2 + $0x64] ss:$8 sps:$4 sm:$0xff]   ;;  %v2777_v21 = vld [vmem:[#allocation2 + $0x60] ss:$8 sps:$4 sm:$0xff]   ;;  %v2778_v22 = vld [vmem:[#allocation2 + $0x74] ss:$8 sps:$4 sm:$0xff]  }
  0x2c   :  { %898 = vmatpush1.bf16.msra.mxu0 %v2762_v3  ;;  %v61_v19 = vld [vmem:[%s3313_s0] sm:$0xff]  ;;  %v2780_v25 = vld [vmem:[#allocation2 + $0x70] ss:$8 sps:$4 sm:$0xff]   ;;  %v2784_v28 = vld [vmem:[#allocation2 + $0x94] ss:$8 sps:$4 sm:$0xff]  }
  0x2d   :  { %899 = vmatprep.subr.bf16.mxu0 %v2763_v4  ;;  %v3144_v16 = vsub.s32 %v68_v12, %v3141_v13  ;;  %v2781_v26 = vld [vmem:[#allocation2 + $0x84] ss:$8 sps:$4 sm:$0xff]   ;;  %v2783_v27 = vld [vmem:[#allocation2 + $0x80] ss:$8 sps:$4 sm:$0xff]   ;;  %v2786_v29 = vld [vmem:[#allocation2 + $0x90] ss:$8 sps:$4 sm:$0xff]   ;;  %v65_v38 = vcombine.high %v61_v19, %v61_v19 }
  0x2e   :  { %v2787_v30 = vld [vmem:[#allocation2 + $0xa4] ss:$8 sps:$4 sm:$0xff]   ;;  %v2789_v31 = vld [vmem:[#allocation2 + $0xa0] ss:$8 sps:$4 sm:$0xff]   ;;  %v2790_v32 = vld [vmem:[#allocation2 + $0xb4] ss:$8 sps:$4 sm:$0xff]  }
  0x2f   :  { %v72_v20 = vrot.slane %v61_v19, %v3144_v16  ;;  %v2792_v33 = vld [vmem:[#allocation2 + $0xb0] ss:$8 sps:$4 sm:$0xff]   ;;  %v2793_v34 = vld [vmem:[#allocation2 + $0xc4] ss:$8 sps:$4 sm:$0xff]   ;;  %v2795_v35 = vld [vmem:[#allocation2 + $0xc0] ss:$8 sps:$4 sm:$0xff]   ;;  %v3151_v41 = vrot.slane %v65_v38, %v3144_v16 }
  0x30   :  { %900 = vmatpush1.bf16.msra.mxu0 %v2765_v5  ;;  %v2796_v36 = vld [vmem:[#allocation2 + $0xd4] ss:$8 sps:$4 sm:$0xff]   ;;  %v2798_v37 = vld [vmem:[#allocation2 + $0xd0] ss:$8 sps:$4 sm:$0xff]   ;;  %v2799_v39 = vld [vmem:[#allocation2 + $0xe4] ss:$8 sps:$4 sm:$0xff]  }
  0x31   :  { %901 = vmatprep.subr.bf16.mxu0 %v2766_v6  ;;  %v80_v23 = vcombine.high %v72_v20, %v72_v20  ;;  %v2801_v40 = vld [vmem:[#allocation2 + $0xe0] ss:$8 sps:$4 sm:$0xff]   ;;  %v2802_v42 = vld [vmem:[#allocation2 + $0xf4] ss:$8 sps:$4 sm:$0xff]   ;;  %v2804_v43 = vld [vmem:[#allocation2 + $0xf0] ss:$8 sps:$4 sm:$0xff]   ;;  %v81_v44 = vcombine.high %v3151_v41, %v3151_v41  ;;  %v107_v46 = vpack.c.bf16 %v72_v20, %v72_v20 }
  0x32   :  { %v2808_v45 = vld [vmem:[#allocation2 + $0x104] ss:$8 sps:$4 sm:$0xff]   ;;  %v2806_v47 = vld [vmem:[#allocation2 + $0x100] ss:$8 sps:$4 sm:$0xff]   ;;  %v2811_v49 = vld [vmem:[#allocation2 + $0x114] ss:$8 sps:$4 sm:$0xff]  }
  0x33   :  { %v108_v24 = vpack.c.bf16 %v80_v23, %v80_v23  ;;  %v110_v48 = vpack.c.bf16 %v81_v44, %v81_v44  ;;  %v2809_v50 = vld [vmem:[#allocation2 + $0x110] ss:$8 sps:$4 sm:$0xff]   ;;  %v2814_v51 = vld [vmem:[#allocation2 + $0x124] ss:$8 sps:$4 sm:$0xff]   ;;  %v2812_v52 = vld [vmem:[#allocation2 + $0x120] ss:$8 sps:$4 sm:$0xff]  }
  0x34   :  { %902 = vmatpush1.bf16.msra.mxu0 %v2768_v10  ;;  %v2817_v53 = vld [vmem:[#allocation2 + $0x134] ss:$8 sps:$4 sm:$0xff]   ;;  %v2815_v54 = vld [vmem:[#allocation2 + $0x130] ss:$8 sps:$4 sm:$0xff]   ;;  %v2820_v55 = vld [vmem:[#allocation2 + $0x144] ss:$8 sps:$4 sm:$0xff]  }
  0x35   :  { %903 = vmatprep.subr.bf16.mxu0 %v2769_v11  ;;  %927 = vmatprep.mubr.bf16.mxu0 %v108_v24  ;;  %v2818_v56 = vld [vmem:[#allocation2 + $0x140] ss:$8 sps:$4 sm:$0xff]   ;;  %v2823_v57 = vld [vmem:[#allocation2 + $0x154] ss:$8 sps:$4 sm:$0xff]   ;;  %v2821_v58 = vld [vmem:[#allocation2 + $0x150] ss:$8 sps:$4 sm:$0xff]  }
  0x36   :  { %v2826_v59 = vld [vmem:[#allocation2 + $0x164] ss:$8 sps:$4 sm:$0xff]   ;;  %v2824_v60 = vld [vmem:[#allocation2 + $0x160] ss:$8 sps:$4 sm:$0xff]   ;;  %v2829_v61 = vld [vmem:[#allocation2 + $0x174] ss:$8 sps:$4 sm:$0xff]  }
  0x37   :  { %v2827_v62 = vld [vmem:[#allocation2 + $0x170] ss:$8 sps:$4 sm:$0xff]   ;;  %v2832_v63 = vld [vmem:[#allocation2 + $0x184] ss:$8 sps:$4 sm:$0xff]   ;;  %v2830_v0 = vld [vmem:[#allocation2 + $0x180] ss:$8 sps:$4 sm:$0xff]  }
  0x38   :  { %904 = vmatpush1.bf16.msra.mxu0 %v2771_v14  ;;  %v2835_v1 = vld [vmem:[#allocation2 + $0x194] ss:$8 sps:$4 sm:$0xff]   ;;  %v2833_v2 = vld [vmem:[#allocation2 + $0x190] ss:$8 sps:$4 sm:$0xff]   ;;  %v2838_v3 = vld [vmem:[#allocation2 + $0x1a4] ss:$8 sps:$4 sm:$0xff]  }
  0x39   :  { %905 = vmatprep.subr.bf16.mxu0 %v2772_v15  ;;  %v2836_v4 = vld [vmem:[#allocation2 + $0x1a0] ss:$8 sps:$4 sm:$0xff]   ;;  %v2841_v5 = vld [vmem:[#allocation2 + $0x1b4] ss:$8 sps:$4 sm:$0xff]   ;;  %v2839_v6 = vld [vmem:[#allocation2 + $0x1b0] ss:$8 sps:$4 sm:$0xff]  }
  0x3a   :  { %v2844_v7 = vld [vmem:[#allocation2 + $0x1c4] ss:$8 sps:$4 sm:$0xff]   ;;  %v2842_v8 = vld [vmem:[#allocation2 + $0x1c0] ss:$8 sps:$4 sm:$0xff]   ;;  %v2847_v9 = vld [vmem:[#allocation2 + $0x1d4] ss:$8 sps:$4 sm:$0xff]  }
  0x3b   :  { %v2845_v10 = vld [vmem:[#allocation2 + $0x1d0] ss:$8 sps:$4 sm:$0xff]   ;;  %v2850_v11 = vld [vmem:[#allocation2 + $0x1e4] ss:$8 sps:$4 sm:$0xff]   ;;  %v2848_v14 = vld [vmem:[#allocation2 + $0x1e0] ss:$8 sps:$4 sm:$0xff]  }
  0x3c   :  { %906 = vmatpush1.bf16.msra.mxu0 %v2774_v17  ;;  %v3158_v12 = vld [vmem:[%s3313_s0 + $0x8] sm:$0xff]  ;;  %v2853_v17 = vld [vmem:[#allocation2 + $0x1f4] ss:$8 sps:$4 sm:$0xff]  }
  0x3d   :  { %907 = vmatprep.subr.bf16.mxu0 %v2775_v18  ;;  %v3162_v15 = vrot.slane %v3158_v12, %v3144_v16  ;;  %v2851_v18 = vld [vmem:[#allocation2 + $0x1f0] ss:$8 sps:$4 sm:$0xff]   ;;  %v2856_v20 = vld [vmem:[#allocation2 + $0x204] ss:$8 sps:$4 sm:$0xff]   ;;  %v2859_v24 = vld [vmem:[#allocation2 + $0x214] ss:$8 sps:$4 sm:$0xff]  }
  0x3e   :  { %v2880_v38 = vld [vmem:[#allocation2 + $0x284] ss:$8 sps:$4 sm:$0xff]   ;;  %v2889_v44 = vld [vmem:[#allocation2 + $0x2b4] ss:$8 sps:$4 sm:$0xff]  }
  0x3f   :  { %v97_v19 = vcombine.high %v3162_v15, %v3162_v15 }
  0x40   :  { %908 = vmatpush1.bf16.msra.mxu0 %v2777_v21  ;;  %v109_v21 = vpack.c.bf16 %v3151_v41, %v3151_v41  ;;  %v2881_v41 = vld [vmem:[#allocation2 + $0x290] ss:$8 sps:$4 sm:$0xff]  }
  0x41   :  { %909 = vmatprep.subr.bf16.mxu0 %v2778_v22  ;;  %v2854_v22 = vld [vmem:[#allocation2 + $0x200] ss:$8 sps:$4 sm:$0xff]   ;;  %v112_v23 = vpack.c.bf16 %v97_v19, %v97_v19  ;;  %v2937_v19 = vld [vmem:[#allocation2 + $0x3b4] ss:$8 sps:$4 sm:$0xff]  }
  0x44   :  { %910 = vmatpush1.bf16.msra.mxu0 %v2780_v25  ;;  %v2857_v25 = vld [vmem:[#allocation2 + $0x210] ss:$8 sps:$4 sm:$0xff]  }
  0x45   :  { %911 = vmatprep.subr.bf16.mxu0 %v2781_v26  ;;  %v2862_v26 = vld [vmem:[#allocation2 + $0x224] ss:$8 sps:$4 sm:$0xff]  }
  0x48   :  { %912 = vmatpush1.bf16.msra.mxu0 %v2783_v27  ;;  %v2860_v27 = vld [vmem:[#allocation2 + $0x220] ss:$8 sps:$4 sm:$0xff]  }
  0x49   :  { %913 = vmatprep.subr.bf16.mxu0 %v2784_v28  ;;  %v2865_v28 = vld [vmem:[#allocation2 + $0x234] ss:$8 sps:$4 sm:$0xff]  }
  0x4c   :  { %914 = vmatpush1.bf16.msra.mxu0 %v2786_v29  ;;  %v2863_v29 = vld [vmem:[#allocation2 + $0x230] ss:$8 sps:$4 sm:$0xff]  }
  0x4d   :  { %915 = vmatprep.subr.bf16.mxu0 %v2787_v30  ;;  %v2868_v30 = vld [vmem:[#allocation2 + $0x244] ss:$8 sps:$4 sm:$0xff]  }
  0x50   :  { %916 = vmatpush1.bf16.msra.mxu0 %v2789_v31  ;;  %v2866_v31 = vld [vmem:[#allocation2 + $0x240] ss:$8 sps:$4 sm:$0xff]  }
  0x51   :  { %917 = vmatprep.subr.bf16.mxu0 %v2790_v32  ;;  %v2871_v32 = vld [vmem:[#allocation2 + $0x254] ss:$8 sps:$4 sm:$0xff]  }
  0x54   :  { %918 = vmatpush1.bf16.msra.mxu0 %v2792_v33  ;;  %v2869_v33 = vld [vmem:[#allocation2 + $0x250] ss:$8 sps:$4 sm:$0xff]  }
  0x55   :  { %919 = vmatprep.subr.bf16.mxu0 %v2793_v34  ;;  %v2874_v34 = vld [vmem:[#allocation2 + $0x264] ss:$8 sps:$4 sm:$0xff]  }
  0x58   :  { %920 = vmatpush1.bf16.msra.mxu0 %v2795_v35  ;;  %v2872_v35 = vld [vmem:[#allocation2 + $0x260] ss:$8 sps:$4 sm:$0xff]  }
  0x59   :  { %921 = vmatprep.subr.bf16.mxu0 %v2796_v36  ;;  %v2877_v36 = vld [vmem:[#allocation2 + $0x274] ss:$8 sps:$4 sm:$0xff]  }
  0x5c   :  { %922 = vmatpush1.bf16.msra.mxu0 %v2798_v37  ;;  %v2875_v37 = vld [vmem:[#allocation2 + $0x270] ss:$8 sps:$4 sm:$0xff]  }
  0x5d   :  { %923 = vmatprep.subr.bf16.mxu0 %v2799_v39  ;;  %v2878_v39 = vld [vmem:[#allocation2 + $0x280] ss:$8 sps:$4 sm:$0xff]  }
  0x60   :  { %924 = vmatpush1.bf16.msra.mxu0 %v2801_v40  ;;  %v2883_v40 = vld [vmem:[#allocation2 + $0x294] ss:$8 sps:$4 sm:$0xff]  }
  0x61   :  { %925 = vmatprep.subr.bf16.mxu0 %v2802_v42  ;;  %v2886_v42 = vld [vmem:[#allocation2 + $0x2a4] ss:$8 sps:$4 sm:$0xff]  }
  0x64   :  { %926 = vmatpush1.bf16.msra.mxu0 %v2804_v43  ;;  %v2884_v43 = vld [vmem:[#allocation2 + $0x2a0] ss:$8 sps:$4 sm:$0xff]  }
  0x65   :  { %936 = vmatprep.subr.bf16.mxu0 %v2808_v45  ;;  %v2887_v45 = vld [vmem:[#allocation2 + $0x2b0] ss:$8 sps:$4 sm:$0xff]  }
  0x67   :  { %928 = vmatmul.mubr.bf16.vlgmr.msra.gmra.mrb[0].mxu0 %v107_v46  ;;  %v2892_v46 = vld [vmem:[#allocation2 + $0x2c4] ss:$8 sps:$4 sm:$0xff]  }
  0x68   :  { %937 = vmatpush1.bf16.msra.mxu0 %v2806_v47  ;;  %968 = vmatprep.mubr.bf16.mxu0 %v110_v48  ;;  %v2890_v47 = vld [vmem:[#allocation2 + $0x2c0] ss:$8 sps:$4 sm:$0xff]   ;;  %v2895_v48 = vld [vmem:[#allocation2 + $0x2d4] ss:$8 sps:$4 sm:$0xff]  }
  0x69   :  { %938 = vmatprep.subr.bf16.mxu0 %v2811_v49  ;;  %v2893_v49 = vld [vmem:[#allocation2 + $0x2d0] ss:$8 sps:$4 sm:$0xff]  }
  0x6c   :  { %939 = vmatpush1.bf16.msra.mxu0 %v2809_v50  ;;  %v82_v50 = vcombine.high %v3158_v12, %v3158_v12  ;;  %v2926_v12 = vld [vmem:[#allocation2 + $0x380] ss:$8 sps:$4 sm:$0xff]  }
  0x6d   :  { %940 = vmatprep.subr.bf16.mxu0 %v2814_v51  ;;  %v2898_v51 = vld [vmem:[#allocation2 + $0x2e4] ss:$8 sps:$4 sm:$0xff]  }
  0x70   :  { %941 = vmatpush1.bf16.msra.mxu0 %v2812_v52  ;;  %v2896_v52 = vld [vmem:[#allocation2 + $0x2e0] ss:$8 sps:$4 sm:$0xff]  }
  0x71   :  { %942 = vmatprep.subr.bf16.mxu0 %v2817_v53  ;;  %v3171_v53 = vrot.slane %v82_v50, %v3144_v16  ;;  %v3240_v50 = vsub.s32 0, %v3141_v13 }
  0x74   :  { %943 = vmatpush1.bf16.msra.mxu0 %v2815_v54  ;;  %v2901_v54 = vld [vmem:[#allocation2 + $0x2f4] ss:$8 sps:$4 sm:$0xff]  }
  0x75   :  { %944 = vmatprep.subr.bf16.mxu0 %v2820_v55  ;;  %v2899_v55 = vld [vmem:[#allocation2 + $0x2f0] ss:$8 sps:$4 sm:$0xff]  }
  0x78   :  { %945 = vmatpush1.bf16.msra.mxu0 %v2818_v56  ;;  %v98_v56 = vcombine.high %v3171_v53, %v3171_v53 }
  0x79   :  { %946 = vmatprep.subr.bf16.mxu0 %v2823_v57  ;;  %v2904_v57 = vld [vmem:[#allocation2 + $0x304] ss:$8 sps:$4 sm:$0xff]  }
  0x7c   :  { %947 = vmatpush1.bf16.msra.mxu0 %v2821_v58  ;;  %v111_v58 = vpack.c.bf16 %v3162_v15, %v3162_v15  ;;  %v2929_v15 = vld [vmem:[#allocation2 + $0x390] ss:$8 sps:$4 sm:$0xff]  }
  0x7d   :  { %948 = vmatprep.subr.bf16.mxu0 %v2826_v59  ;;  %v2902_v59 = vld [vmem:[#allocation2 + $0x300] ss:$8 sps:$4 sm:$0xff]  }
  0x80   :  { %949 = vmatpush1.bf16.msra.mxu0 %v2824_v60  ;;  %v114_v60 = vpack.c.bf16 %v98_v56, %v98_v56 }
  0x81   :  { %950 = vmatprep.subr.bf16.mxu0 %v2829_v61  ;;  %v2907_v61 = vld [vmem:[#allocation2 + $0x314] ss:$8 sps:$4 sm:$0xff]  }
  0x84   :  { %951 = vmatpush1.bf16.msra.mxu0 %v2827_v62  ;;  %v2905_v62 = vld [vmem:[#allocation2 + $0x310] ss:$8 sps:$4 sm:$0xff]  }
  0x85   :  { %952 = vmatprep.subr.bf16.mxu0 %v2832_v63  ;;  %v2910_v63 = vld [vmem:[#allocation2 + $0x324] ss:$8 sps:$4 sm:$0xff]  }
  0x88   :  { %953 = vmatpush1.bf16.msra.mxu0 %v2830_v0  ;;  %v2908_v0 = vld [vmem:[#allocation2 + $0x320] ss:$8 sps:$4 sm:$0xff]  }
  0x89   :  { %954 = vmatprep.subr.bf16.mxu0 %v2835_v1  ;;  %v2913_v1 = vld [vmem:[#allocation2 + $0x334] ss:$8 sps:$4 sm:$0xff]  }
  0x8c   :  { %955 = vmatpush1.bf16.msra.mxu0 %v2833_v2  ;;  %v2911_v2 = vld [vmem:[#allocation2 + $0x330] ss:$8 sps:$4 sm:$0xff]  }
  0x8d   :  { %956 = vmatprep.subr.bf16.mxu0 %v2838_v3  ;;  %v2916_v3 = vld [vmem:[#allocation2 + $0x344] ss:$8 sps:$4 sm:$0xff]  }
  0x90   :  { %957 = vmatpush1.bf16.msra.mxu0 %v2836_v4  ;;  %v2914_v4 = vld [vmem:[#allocation2 + $0x340] ss:$8 sps:$4 sm:$0xff]  }
  0x91   :  { %958 = vmatprep.subr.bf16.mxu0 %v2841_v5  ;;  %v2919_v5 = vld [vmem:[#allocation2 + $0x354] ss:$8 sps:$4 sm:$0xff]  }
  0x94   :  { %959 = vmatpush1.bf16.msra.mxu0 %v2839_v6  ;;  %v2917_v6 = vld [vmem:[#allocation2 + $0x350] ss:$8 sps:$4 sm:$0xff]  }
  0x95   :  { %960 = vmatprep.subr.bf16.mxu0 %v2844_v7  ;;  %v2922_v7 = vld [vmem:[#allocation2 + $0x364] ss:$8 sps:$4 sm:$0xff]  }
  0x98   :  { %961 = vmatpush1.bf16.msra.mxu0 %v2842_v8  ;;  %v2920_v8 = vld [vmem:[#allocation2 + $0x360] ss:$8 sps:$4 sm:$0xff]  }
  0x99   :  { %962 = vmatprep.subr.bf16.mxu0 %v2847_v9  ;;  %v2925_v9 = vld [vmem:[#allocation2 + $0x374] ss:$8 sps:$4 sm:$0xff]  }
  0x9c   :  { %963 = vmatpush1.bf16.msra.mxu0 %v2845_v10  ;;  %v2923_v10 = vld [vmem:[#allocation2 + $0x370] ss:$8 sps:$4 sm:$0xff]  }
  0x9d   :  { %964 = vmatprep.subr.bf16.mxu0 %v2850_v11  ;;  %v2928_v11 = vld [vmem:[#allocation2 + $0x384] ss:$8 sps:$4 sm:$0xff]  }
  0xa0   :  { %965 = vmatpush1.bf16.msra.mxu0 %v2848_v14  ;;  %v2931_v14 = vld [vmem:[#allocation2 + $0x394] ss:$8 sps:$4 sm:$0xff]  }
  0xa1   :  { %966 = vmatprep.subr.bf16.mxu0 %v2853_v17  ;;  %v2934_v17 = vld [vmem:[#allocation2 + $0x3a4] ss:$8 sps:$4 sm:$0xff]  }
  0xa4   :  { %967 = vmatpush1.bf16.msra.mxu0 %v2851_v18  ;;  %v2932_v18 = vld [vmem:[#allocation2 + $0x3a0] ss:$8 sps:$4 sm:$0xff]  }
  0xa5   :  { %977 = vmatprep.subr.bf16.mxu0 %v2856_v20  ;;  %v2935_v20 = vld [vmem:[#allocation2 + $0x3b0] ss:$8 sps:$4 sm:$0xff]  }
  0xa7   :  { %969 = vmatmul.mubr.bf16.vlgmr.msra.gmra.mrb[0].mxu0 %v109_v21  ;;  %v2940_v21 = vld [vmem:[#allocation2 + $0x3c4] ss:$8 sps:$4 sm:$0xff]  }
  0xa8   :  { %978 = vmatpush1.bf16.msra.mxu0 %v2854_v22  ;;  %1009 = vmatprep.mubr.bf16.mxu0 %v112_v23  ;;  %v2938_v22 = vld [vmem:[#allocation2 + $0x3c0] ss:$8 sps:$4 sm:$0xff]   ;;  %v2943_v23 = vld [vmem:[#allocation2 + $0x3d4] ss:$8 sps:$4 sm:$0xff]  }
  0xa9   :  { %979 = vmatprep.subr.bf16.mxu0 %v2859_v24  ;;  %v2941_v24 = vld [vmem:[#allocation2 + $0x3d0] ss:$8 sps:$4 sm:$0xff]  }
  0xac   :  { %980 = vmatpush1.bf16.msra.mxu0 %v2857_v25  ;;  %v2946_v25 = vld [vmem:[#allocation2 + $0x3e4] ss:$8 sps:$4 sm:$0xff]  }
  0xad   :  { %981 = vmatprep.subr.bf16.mxu0 %v2862_v26  ;;  %v2944_v26 = vld [vmem:[#allocation2 + $0x3e0] ss:$8 sps:$4 sm:$0xff]  }
  0xb0   :  { %982 = vmatpush1.bf16.msra.mxu0 %v2860_v27  ;;  %v2949_v27 = vld [vmem:[#allocation2 + $0x3f4] ss:$8 sps:$4 sm:$0xff]  }
  0xb1   :  { %983 = vmatprep.subr.bf16.mxu0 %v2865_v28  ;;  %v2947_v28 = vld [vmem:[#allocation2 + $0x3f0] ss:$8 sps:$4 sm:$0xff]  }
  0xb4   :  { %984 = vmatpush1.bf16.msra.mxu0 %v2863_v29  ;;  %v2951_v29 = vld [vmem:[%s3316_s3 + $0x40] sm:$0xff]  }
  0xb5   :  { %985 = vmatprep.subr.bf16.mxu0 %v2868_v30  ;;  %v113_v30 = vpack.c.bf16 %v3171_v53, %v3171_v53 }
  0xb8   :  { %986 = vmatpush1.bf16.msra.mxu0 %v2866_v31  ;;  %v2952_v31 = vld [vmem:[%s3316_s3] sm:$0xff]  }
  0xb9   :  { %987 = vmatprep.subr.bf16.mxu0 %v2871_v32  ;;  %v2953_v32 = vld [vmem:[%s3316_s3 + $0x48] sm:$0xff]  }
  0xbc   :  { %988 = vmatpush1.bf16.msra.mxu0 %v2869_v33  ;;  %v2954_v33 = vld [vmem:[%s3316_s3 + $0x8] sm:$0xff]  }
  0xbd   :  { %989 = vmatprep.subr.bf16.mxu0 %v2874_v34  ;;  %v2955_v34 = vld [vmem:[%s3316_s3 + $0x50] sm:$0xff]  }
  0xc0   :  { %990 = vmatpush1.bf16.msra.mxu0 %v2872_v35  ;;  %v2956_v35 = vld [vmem:[%s3316_s3 + $0x10] sm:$0xff]  }
  0xc1   :  { %991 = vmatprep.subr.bf16.mxu0 %v2877_v36  ;;  %v2957_v36 = vld [vmem:[%s3316_s3 + $0x58] sm:$0xff]  }
  0xc4   :  { %992 = vmatpush1.bf16.msra.mxu0 %v2875_v37  ;;  %v2958_v37 = vld [vmem:[%s3316_s3 + $0x18] sm:$0xff]  }
  0xc5   :  { %993 = vmatprep.subr.bf16.mxu0 %v2880_v38  ;;  %v2959_v38 = vld [vmem:[%s3316_s3 + $0x60] sm:$0xff]  }
  0xc8   :  { %994 = vmatpush1.bf16.msra.mxu0 %v2878_v39  ;;  %v2960_v39 = vld [vmem:[%s3316_s3 + $0x20] sm:$0xff]  }
  0xc9   :  { %995 = vmatprep.subr.bf16.mxu0 %v2883_v40  ;;  %v2961_v40 = vld [vmem:[%s3316_s3 + $0x68] sm:$0xff]  }
  0xcc   :  { %996 = vmatpush1.bf16.msra.mxu0 %v2881_v41  ;;  %v2962_v41 = vld [vmem:[%s3316_s3 + $0x28] sm:$0xff]  }
  0xcd   :  { %997 = vmatprep.subr.bf16.mxu0 %v2886_v42  ;;  %v2963_v42 = vld [vmem:[%s3316_s3 + $0x70] sm:$0xff]  }
  0xd0   :  { %998 = vmatpush1.bf16.msra.mxu0 %v2884_v43  ;;  %v2964_v43 = vld [vmem:[%s3316_s3 + $0x30] sm:$0xff]  }
  0xd1   :  { %999 = vmatprep.subr.bf16.mxu0 %v2889_v44  ;;  %v2965_v44 = vld [vmem:[%s3316_s3 + $0x78] sm:$0xff]  }
  0xd4   :  { %1000 = vmatpush1.bf16.msra.mxu0 %v2887_v45  ;;  %v2966_v45 = vld [vmem:[%s3316_s3 + $0x38] sm:$0xff]  }
  0xd5   :  { %1001 = vmatprep.subr.bf16.mxu0 %v2892_v46  ;;  %v2967_v46 = vld [vmem:[%s3318_s5 + $0x4] ss:$8 sps:$4 sm:$0xff]  }
  0xd6   :  { %1304 = vmatprep.subr.bf16.mxu1 %v2967_v46 }
  0xd8   :  { %1002 = vmatpush1.bf16.msra.mxu0 %v2890_v47  ;;  %v2969_v47 = vld [vmem:[%s3318_s5] ss:$8 sps:$4 sm:$0xff]  }
  0xd9   :  { %1003 = vmatprep.subr.bf16.mxu0 %v2895_v48  ;;  %v2970_v48 = vld [vmem:[%s3318_s5 + $0x14] ss:$8 sps:$4 sm:$0xff]   ;;  %1305 = vmatpush1.bf16.msra.mxu1 %v2969_v47 }
  0xda   :  { %1306 = vmatprep.subr.bf16.mxu1 %v2970_v48  ;;  %v1413_v48 = vld [vmem:[#allocation4 + $0x200] sm:$0xff] }
  0xdc   :  { %1004 = vmatpush1.bf16.msra.mxu0 %v2893_v49  ;;  %v2972_v49 = vld [vmem:[%s3318_s5 + $0x10] ss:$8 sps:$4 sm:$0xff]  }
  0xdd   :  { %1005 = vmatprep.subr.bf16.mxu0 %v2898_v51  ;;  %1307 = vmatpush1.bf16.msra.mxu1 %v2972_v49  ;;  %v243_v51 = vld [vmem:[%s3315_s2] sm:$0x3] }
  0xde   :  { %v248_v53 = vrot.slane %v243_v51, %v3240_v50  ;;  %v1417_v49 = vld [vmem:[#allocation4 + $0x220] sm:$0xff] }
  0xe0   :  { %1006 = vmatpush1.bf16.msra.mxu0 %v2896_v52  ;;  %v3246_v52 = vsub.s32 1, %v3141_v13 }
  0xe1   :  { %1007 = vmatprep.subr.bf16.mxu0 %v2901_v54 }
  0xe2   :  { %v252_v54 = vrot.slane %v243_v51, %v3246_v52 }
  0xe4   :  { %1008 = vmatpush1.bf16.msra.mxu0 %v2899_v55 }
  0xe5   :  { %1018 = vmatprep.subr.bf16.mxu0 %v2904_v57 }
  0xe7   :  { %1010 = vmatmul.mubr.bf16.vlgmr.msra.gmra.mrb[0].mxu0 %v111_v58 }
  0xe8   :  { %1019 = vmatpush1.bf16.msra.mxu0 %v2902_v59  ;;  %1050 = vmatprep.mubr.bf16.mxu0 %v114_v60 }
  0xe9   :  { %1020 = vmatprep.subr.bf16.mxu0 %v2907_v61 }
  0xec   :  { %1021 = vmatpush1.bf16.msra.mxu0 %v2905_v62 }
  0xed   :  { %1022 = vmatprep.subr.bf16.mxu0 %v2910_v63 }
  0xf0   :  { %1023 = vmatpush1.bf16.msra.mxu0 %v2908_v0 }
  0xf1   :  { %1024 = vmatprep.subr.bf16.mxu0 %v2913_v1  ;;  %v2973_v1 = vld [vmem:[%s3318_s5 + $0x24] ss:$8 sps:$4 sm:$0xff]  }
  0xf2   :  { %1308 = vmatprep.subr.bf16.mxu1 %v2973_v1 }
  0xf4   :  { %1025 = vmatpush1.bf16.msra.mxu0 %v2911_v2  ;;  %v2975_v2 = vld [vmem:[%s3318_s5 + $0x20] ss:$8 sps:$4 sm:$0xff]  }
  0xf5   :  { %1026 = vmatprep.subr.bf16.mxu0 %v2916_v3  ;;  %1309 = vmatpush1.bf16.msra.mxu1 %v2975_v2  ;;  %v2976_v3 = vld [vmem:[%s3318_s5 + $0x34] ss:$8 sps:$4 sm:$0xff]   ;;  %v1445_v2 = vld [vmem:[#allocation4 + $0x300] sm:$0xff] }
  0xf6   :  { %1310 = vmatprep.subr.bf16.mxu1 %v2976_v3  ;;  %v1449_v3 = vld [vmem:[#allocation4 + $0x320] sm:$0xff] }
  0xf8   :  { %1027 = vmatpush1.bf16.msra.mxu0 %v2914_v4  ;;  %v2978_v4 = vld [vmem:[%s3318_s5 + $0x30] ss:$8 sps:$4 sm:$0xff]  }
  0xf9   :  { %1028 = vmatprep.subr.bf16.mxu0 %v2919_v5  ;;  %1311 = vmatpush1.bf16.msra.mxu1 %v2978_v4  ;;  %v3066_v5 = vmov 0  }
  0xfa   :  { %1336 = vmatprep.mubr.bf16.mxu1 %v3066_v5  ;;  %v2674_v5 = vcombine.high %v1445_v2, %v1449_v3 }
  0xfc   :  { %1029 = vmatpush1.bf16.msra.mxu0 %v2917_v6  ;;  %v1349_v6 = vld [vmem:[#allocation4] sm:$0xff] }
  0xfd   :  { %1030 = vmatprep.subr.bf16.mxu0 %v2922_v7  ;;  %v1353_v7 = vld [vmem:[#allocation4 + $0x20] sm:$0xff] }
 0x100   :  { %1031 = vmatpush1.bf16.msra.mxu0 %v2920_v8  ;;  %v2577_v8 = vcombine.low %v1349_v6, %v1353_v7 }
 0x101   :  { %1032 = vmatprep.subr.bf16.mxu0 %v2925_v9  ;;  %v2578_v9 = vcombine.high %v1349_v6, %v1353_v7  ;;  %v1453_v6 = vld [vmem:[#allocation4 + $0x340] sm:$0xff] }
 0x102   :  { %v1457_v7 = vld [vmem:[#allocation4 + $0x360] sm:$0xff] }
 0x103   :  { %2159 = vmatprep.subr.bf16.mxu1 %v2578_v9  ;;  %v2682_v9 = vcombine.high %v1453_v6, %v1457_v7 }
 0x104   :  { %1033 = vmatpush1.bf16.msra.mxu0 %v2923_v10 }
 0x105   :  { %1034 = vmatprep.subr.bf16.mxu0 %v2928_v11  ;;  %v2551_v11 = vld [vmem:[%s3317_s4] ss:$0 sm:$0xff] }
 0x108   :  { %1035 = vmatpush1.bf16.msra.mxu0 %v2926_v12 }
 0x109   :  { %1036 = vmatprep.subr.bf16.mxu0 %v2931_v14 }
 0x10c   :  { %1037 = vmatpush1.bf16.msra.mxu0 %v2929_v15 }
 0x10d   :  { %1038 = vmatprep.subr.bf16.mxu0 %v2934_v17 }
 0x110   :  { %1039 = vmatpush1.bf16.msra.mxu0 %v2932_v18 }
 0x111   :  { %1040 = vmatprep.subr.bf16.mxu0 %v2937_v19  ;;  %v1357_v19 = vld [vmem:[#allocation4 + $0x40] sm:$0xff] }
 0x114   :  { %1041 = vmatpush1.bf16.msra.mxu0 %v2935_v20  ;;  %v1361_v20 = vld [vmem:[#allocation4 + $0x60] sm:$0xff] }
 0x115   :  { %1042 = vmatprep.subr.bf16.mxu0 %v2940_v21 }
 0x118   :  { %1043 = vmatpush1.bf16.msra.mxu0 %v2938_v22 }
 0x119   :  { %1044 = vmatprep.subr.bf16.mxu0 %v2943_v23  ;;  %v2586_v23 = vcombine.high %v1357_v19, %v1361_v20 }
 0x11c   :  { %1045 = vmatpush1.bf16.msra.mxu0 %v2941_v24  ;;  %v1365_v24 = vld [vmem:[#allocation4 + $0x80] sm:$0xff] }
 0x11d   :  { %1046 = vmatprep.subr.bf16.mxu0 %v2946_v25  ;;  %v1369_v25 = vld [vmem:[#allocation4 + $0xa0] sm:$0xff] }
 0x120   :  { %1047 = vmatpush1.bf16.msra.mxu0 %v2944_v26  ;;  %v2585_v26 = vcombine.low %v1357_v19, %v1361_v20 }
 0x121   :  { %1048 = vmatprep.subr.bf16.mxu0 %v2949_v27  ;;  %v2594_v27 = vcombine.high %v1365_v24, %v1369_v25 }
 0x124   :  { %1049 = vmatpush1.bf16.msra.mxu0 %v2947_v28  ;;  %v1373_v28 = vld [vmem:[#allocation4 + $0xc0] sm:$0xff] }
 0x125   :  { %2713 = vmatprep.subr.bf16.mxu0 %v2951_v29  ;;  %v1377_v29 = vld [vmem:[#allocation4 + $0xe0] sm:$0xff] }
 0x127   :  { %1051 = vmatmul.mubr.bf16.vlgmr.msra.gmra.mrb[0].mxu0 %v113_v30  ;;  %v2593_v30 = vcombine.low %v1365_v24, %v1369_v25  ;;  %v1248_v25 = vld [vmem:[%s3319_s6] sm:$0x3] }
 0x128   :  { %2714 = vmatpush3.bf16.msra.mxu0 %v2952_v31  ;;  %v2602_v31 = vcombine.high %v1373_v28, %v1377_v29 }
 0x129   :  { %2715 = vmatprep.subr.bf16.mxu0 %v2953_v32  ;;  %v1381_v32 = vld [vmem:[#allocation4 + $0x100] sm:$0xff] }
 0x12c   :  { %2716 = vmatpush3.bf16.msra.mxu0 %v2954_v33  ;;  %v1385_v33 = vld [vmem:[#allocation4 + $0x120] sm:$0xff] }
 0x12d   :  { %2717 = vmatprep.subr.bf16.mxu0 %v2955_v34  ;;  %v2601_v34 = vcombine.low %v1373_v28, %v1377_v29 }
 0x130   :  { %2718 = vmatpush3.bf16.msra.mxu0 %v2956_v35  ;;  %v2610_v35 = vcombine.high %v1381_v32, %v1385_v33 }
 0x131   :  { %2719 = vmatprep.subr.bf16.mxu0 %v2957_v36  ;;  %v1389_v36 = vld [vmem:[#allocation4 + $0x140] sm:$0xff] }
 0x134   :  { %2720 = vmatpush3.bf16.msra.mxu0 %v2958_v37  ;;  %v1393_v37 = vld [vmem:[#allocation4 + $0x160] sm:$0xff] }
 0x135   :  { %2721 = vmatprep.subr.bf16.mxu0 %v2959_v38  ;;  %v2609_v38 = vcombine.low %v1381_v32, %v1385_v33 }
 0x138   :  { %2722 = vmatpush3.bf16.msra.mxu0 %v2960_v39  ;;  %v2618_v39 = vcombine.high %v1389_v36, %v1393_v37 }
 0x139   :  { %2723 = vmatprep.subr.bf16.mxu0 %v2961_v40  ;;  %v1397_v40 = vld [vmem:[#allocation4 + $0x180] sm:$0xff] }
 0x13c   :  { %2724 = vmatpush3.bf16.msra.mxu0 %v2962_v41  ;;  %v1401_v41 = vld [vmem:[#allocation4 + $0x1a0] sm:$0xff] }
 0x13d   :  { %2725 = vmatprep.subr.bf16.mxu0 %v2963_v42  ;;  %v2617_v42 = vcombine.low %v1389_v36, %v1393_v37  ;;  %v2625_v46 = vcombine.low %v1397_v40, %v1401_v41  ;;  %v1358_v36 = vld [vmem:[#allocation4 + $0x48] sm:$0xff] }
 0x13e   :  { %v1362_v37 = vld [vmem:[#allocation4 + $0x68] sm:$0xff] }
 0x140   :  { %2726 = vmatpush3.bf16.msra.mxu0 %v2964_v43  ;;  %v2626_v43 = vcombine.high %v1397_v40, %v1401_v41  ;;  %v2588_v40 = vcombine.high %v1358_v36, %v1362_v37  ;;  %v1366_v41 = vld [vmem:[#allocation4 + $0x88] sm:$0xff] }
 0x141   :  { %2727 = vmatprep.subr.bf16.mxu0 %v2965_v44  ;;  %v1405_v44 = vld [vmem:[#allocation4 + $0x1c0] sm:$0xff] }
 0x144   :  { %2728 = vmatpush3.bf16.msra.mxu0 %v2966_v45  ;;  %v1409_v45 = vld [vmem:[#allocation4 + $0x1e0] sm:$0xff] }
 0x145   :  { %v2634_v47 = vcombine.high %v1405_v44, %v1409_v45  ;;  %v2633_v51 = vcombine.low %v1405_v44, %v1409_v45  ;;  %v1374_v45 = vld [vmem:[#allocation4 + $0xc8] sm:$0xff] }
 0x1fa   :  { %v1052_v55 = vpop.f32.mrb[0].mxu0 }
 0x1fb   :  { %v2735_v56 = vadd.f32 %v1052_v55, %v248_v53  ;;  %v1054_v57 = vpop.f32.mrb[1].mxu0  ;;  %v2642_v53 = vcombine.high %v1413_v48, %v1417_v49  ;;  %v1425_v55 = vld [vmem:[#allocation4 + $0x260] sm:$0xff] }
 0x1fc   :  { %v2736_v58 = vadd.f32 %v1054_v57, %v252_v54  ;;  %v1056_v59 = vpop.f32.mrb[2].mxu0  ;;  %v1421_v54 = vld [vmem:[#allocation4 + $0x240] sm:$0xff] }
 0x1fd   :  { %v1059_v60 = vmax.f32 %v2735_v56, 0.0  ;;  %v1057_v61 = vpop.f32.mrb[3].mxu0  ;;  %v2641_v56 = vcombine.low %v1413_v48, %v1417_v49  ;;  %v2650_v57 = vcombine.high %v1421_v54, %v1425_v55  ;;  %v1433_v59 = vld [vmem:[#allocation4 + $0x2a0] sm:$0xff]  ;;  %v1382_v49 = vld [vmem:[#allocation4 + $0x108] sm:$0xff] }
 0x1fe   :  { %v1060_v62 = vmax.f32 %v2736_v58, 0.0  ;;  %v1429_v58 = vld [vmem:[#allocation4 + $0x280] sm:$0xff] }
 0x1ff   :  { %v1061_v0 = vpack.c.bf16 %v1059_v60, %v1059_v60  ;;  %v2649_v60 = vcombine.low %v1421_v54, %v1425_v55  ;;  %v2658_v61 = vcombine.high %v1429_v58, %v1433_v59  ;;  %v1390_v55 = vld [vmem:[#allocation4 + $0x148] sm:$0xff] }
 0x200   :  { %v1062_v63 = vpack.c.bf16 %v1060_v62, %v1060_v62  ;;  %v1437_v62 = vld [vmem:[#allocation4 + $0x2c0] sm:$0xff] }
 0x202   :  { %1230 = vmatprep.mubr.bf16.mxu0 %v1062_v63  ;;  %v1441_v63 = vld [vmem:[#allocation4 + $0x2e0] sm:$0xff] }
 0x203   :  { %1231 = vmatmul.mubr.bf16.vlgmr.msra.gmra.mrb[4].mxu0 %v1061_v0  ;;  %v2657_v0 = vcombine.low %v1429_v58, %v1433_v59  ;;  %v2666_v1 = vcombine.high %v1437_v62, %v1441_v63  ;;  %v2665_v4 = vcombine.low %v1437_v62, %v1441_v63  ;;  %v1398_v59 = vld [vmem:[#allocation4 + $0x188] sm:$0xff] }
 0x204   :  { %v1406_v63 = vld [vmem:[#allocation4 + $0x1c8] sm:$0xff] }
 0x2d6   :  { %v2729_v10 = vpop.f32.mrb[4].mxu0 }
 0x2d7   :  { %v2730_v12 = vpop.f32.mrb[5].mxu0 }
 0x2d8   :  { %v2731_v14 = vadd.f32 %v2730_v12, %v2729_v10  ;;  %v2732_v15 = vpop.f32.mrb[6].mxu0  ;;  %v2681_v10 = vcombine.low %v1453_v6, %v1457_v7  ;;  %v1465_v12 = vld [vmem:[#allocation4 + $0x3a0] sm:$0xff]  ;;  %v1422_v7 = vld [vmem:[#allocation4 + $0x248] sm:$0xff] }
 0x2d9   :  { %v2733_v17 = vpop.f32.mrb[7].mxu0 }
 0x2da   :  { %v1233_v18 = vadd.f32 %v2731_v14, %v2551_v11  ;;  %v1461_v11 = vld [vmem:[#allocation4 + $0x380] sm:$0xff] }
 0x2db   :  { %v2690_v14 = vcombine.high %v1461_v11, %v1465_v12  ;;  %v2689_v15 = vcombine.low %v1461_v11, %v1465_v12  ;;  %v1469_v17 = vld [vmem:[#allocation4 + $0x3c0] sm:$0xff]  ;;  %v1430_v11 = vld [vmem:[#allocation4 + $0x288] sm:$0xff] }
 0x2dc   :  { %v1238_v21 = vmax.f32 %v1233_v18, 0.0  ;;  %v1473_v18 = vld [vmem:[#allocation4 + $0x3e0] sm:$0xff]  ;;  %v1434_v12 = vld [vmem:[#allocation4 + $0x2a8] sm:$0xff] }
 0x2dd   :  { %v2698_v19 = vcombine.high %v1469_v17, %v1473_v18  ;;  %v2697_v20 = vcombine.low %v1469_v17, %v1473_v18  ;;  %v1438_v17 = vld [vmem:[#allocation4 + $0x2c8] sm:$0xff] }
 0x2de   :  { %v1239_v22 = vpack.c.bf16 %v1238_v21, %v1238_v21  ;;  %v1350_v21 = vld [vmem:[#allocation4 + $0x8] sm:$0xff] }
 0x2df   :  { %v1442_v18 = vld [vmem:[#allocation4 + $0x2e8] sm:$0xff] }
 0x2e0   :  { %2576 = vmatmul.mubr.msk.bf16.vlgmr.msra.gmra.mrb[0].mxu1 %vm1300_vm0, %v1239_v22  ;;  %v1354_v22 = vld [vmem:[#allocation4 + $0x28] sm:$0xff] }
 0x2e1   :  { %2160 = vmatpush1.bf16.msra.mxu1 %v2577_v8  ;;  %v2673_v8 = vcombine.low %v1445_v2, %v1449_v3  ;;  %v2579_v24 = vcombine.low %v1350_v21, %v1354_v22  ;;  %v1414_v3 = vld [vmem:[#allocation4 + $0x208] sm:$0xff] }
 0x2e2   :  { %2161 = vmatprep.subr.bf16.mxu1 %v2586_v23  ;;  %v2580_v23 = vcombine.high %v1350_v21, %v1354_v22  ;;  %v1446_v21 = vld [vmem:[#allocation4 + $0x308] sm:$0xff] }
 0x2e3   :  { %v1450_v22 = vld [vmem:[#allocation4 + $0x328] sm:$0xff] }
 0x2e5   :  { %2162 = vmatpush1.bf16.msra.mxu1 %v2585_v26  ;;  %v1253_v26 = vrot.slane %v1248_v25, %v3240_v50 }
 0x2e6   :  { %2163 = vmatprep.subr.bf16.mxu1 %v2594_v27  ;;  %v1257_v27 = vrot.slane %v1248_v25, %v3246_v52  ;;  %v1454_v25 = vld [vmem:[#allocation4 + $0x348] sm:$0xff] }
 0x2e9   :  { %2164 = vmatpush1.bf16.msra.mxu1 %v2593_v30 }
 0x2ea   :  { %2165 = vmatprep.subr.bf16.mxu1 %v2602_v31 }
 0x2ed   :  { %2166 = vmatpush1.bf16.msra.mxu1 %v2601_v34 }
 0x2ee   :  { %2167 = vmatprep.subr.bf16.mxu1 %v2610_v35 }
 0x2f1   :  { %2168 = vmatpush1.bf16.msra.mxu1 %v2609_v38 }
 0x2f2   :  { %2169 = vmatprep.subr.bf16.mxu1 %v2618_v39 }
 0x2f5   :  { %2170 = vmatpush1.bf16.msra.mxu1 %v2617_v42  ;;  %v1370_v42 = vld [vmem:[#allocation4 + $0xa8] sm:$0xff] }
 0x2f6   :  { %2171 = vmatprep.subr.bf16.mxu1 %v2626_v43  ;;  %v2587_v43 = vcombine.low %v1358_v36, %v1362_v37  ;;  %v2596_v44 = vcombine.high %v1366_v41, %v1370_v42  ;;  %v1351_v37 = vld [vmem:[#allocation4 + $0x10] sm:$0xff] }
 0x2f9   :  { %2172 = vmatpush1.bf16.msra.mxu1 %v2625_v46  ;;  %v1378_v46 = vld [vmem:[#allocation4 + $0xe8] sm:$0xff] }
 0x2fa   :  { %2173 = vmatprep.subr.bf16.mxu1 %v2634_v47  ;;  %v2595_v47 = vcombine.low %v1366_v41, %v1370_v42  ;;  %v2604_v48 = vcombine.high %v1374_v45, %v1378_v46 }
 0x2fd   :  { %2174 = vmatpush1.bf16.msra.mxu1 %v2633_v51  ;;  %v1386_v51 = vld [vmem:[#allocation4 + $0x128] sm:$0xff] }
 0x2fe   :  { %2175 = vmatprep.subr.bf16.mxu1 %v2642_v53  ;;  %v2603_v53 = vcombine.low %v1374_v45, %v1378_v46  ;;  %v2612_v54 = vcombine.high %v1382_v49, %v1386_v51 }
 0x301   :  { %2176 = vmatpush1.bf16.msra.mxu1 %v2641_v56  ;;  %v1394_v56 = vld [vmem:[#allocation4 + $0x168] sm:$0xff] }
 0x302   :  { %2177 = vmatprep.subr.bf16.mxu1 %v2650_v57  ;;  %v2611_v57 = vcombine.low %v1382_v49, %v1386_v51  ;;  %v2620_v58 = vcombine.high %v1390_v55, %v1394_v56 }
 0x305   :  { %2178 = vmatpush1.bf16.msra.mxu1 %v2649_v60  ;;  %v1402_v60 = vld [vmem:[#allocation4 + $0x1a8] sm:$0xff] }
 0x306   :  { %2179 = vmatprep.subr.bf16.mxu1 %v2658_v61  ;;  %v2619_v61 = vcombine.low %v1390_v55, %v1394_v56  ;;  %v2628_v62 = vcombine.high %v1398_v59, %v1402_v60 }
 0x309   :  { %2180 = vmatpush1.bf16.msra.mxu1 %v2657_v0  ;;  %v1410_v0 = vld [vmem:[#allocation4 + $0x1e8] sm:$0xff] }
 0x30a   :  { %2181 = vmatprep.subr.bf16.mxu1 %v2666_v1  ;;  %v2627_v1 = vcombine.low %v1398_v59, %v1402_v60  ;;  %v2636_v2 = vcombine.high %v1406_v63, %v1410_v0 }
 0x30d   :  { %2182 = vmatpush1.bf16.msra.mxu1 %v2665_v4  ;;  %v1418_v4 = vld [vmem:[#allocation4 + $0x228] sm:$0xff] }
 0x30e   :  { %2183 = vmatprep.subr.bf16.mxu1 %v2674_v5  ;;  %v2635_v5 = vcombine.low %v1406_v63, %v1410_v0  ;;  %v2644_v6 = vcombine.high %v1414_v3, %v1418_v4 }
 0x311   :  { %2184 = vmatpush1.bf16.msra.mxu1 %v2673_v8  ;;  %v1426_v8 = vld [vmem:[#allocation4 + $0x268] sm:$0xff] }
 0x312   :  { %2185 = vmatprep.subr.bf16.mxu1 %v2682_v9  ;;  %v2643_v9 = vcombine.low %v1414_v3, %v1418_v4 }
 0x315   :  { %2186 = vmatpush1.bf16.msra.mxu1 %v2681_v10  ;;  %v2652_v10 = vcombine.high %v1422_v7, %v1426_v8 }
 0x316   :  { %2187 = vmatprep.subr.bf16.mxu1 %v2690_v14  ;;  %v2651_v14 = vcombine.low %v1422_v7, %v1426_v8 }
 0x319   :  { %2188 = vmatpush1.bf16.msra.mxu1 %v2689_v15  ;;  %v2660_v15 = vcombine.high %v1430_v11, %v1434_v12 }
 0x31a   :  { %2189 = vmatprep.subr.bf16.mxu1 %v2698_v19  ;;  %v2659_v19 = vcombine.low %v1430_v11, %v1434_v12 }
 0x31d   :  { %2190 = vmatpush1.bf16.msra.mxu1 %v2697_v20  ;;  %v2668_v20 = vcombine.high %v1438_v17, %v1442_v18 }
 0x31e   :  { %2200 = vmatprep.subr.bf16.mxu1 %v2580_v23  ;;  %v2667_v23 = vcombine.low %v1438_v17, %v1442_v18 }
 0x3b3   :  { %v1338_v28 = vpop.f32.mrb[0].mxu1 }
 0x3b4   :  { %v1339_v29 = vadd.f32 %v1338_v28, %v1253_v26  ;;  %v1340_v30 = vpop.f32.mrb[1].mxu1  ;;  %v1458_v26 = vld [vmem:[#allocation4 + $0x368] sm:$0xff] }
 0x3b5   :  { %v1341_v31 = vadd.f32 %v1340_v30, %v1257_v27  ;;  %v1342_v32 = vpop.f32.mrb[2].mxu1  ;;  %v2675_v27 = vcombine.low %v1446_v21, %v1450_v22  ;;  %v2684_v28 = vcombine.high %v1454_v25, %v1458_v26  ;;  %v1466_v30 = vld [vmem:[#allocation4 + $0x3a8] sm:$0xff] }
 0x3b6   :  { %v1345_v33 = vmax.f32 %v1339_v29, 0.0  ;;  %v1343_v34 = vpop.f32.mrb[3].mxu1  ;;  %v1462_v29 = vld [vmem:[#allocation4 + $0x388] sm:$0xff] }
 0x3b7   :  { %v1346_v35 = vmax.f32 %v1341_v31, 0.0  ;;  %v2683_v31 = vcombine.low %v1454_v25, %v1458_v26  ;;  %v2692_v32 = vcombine.high %v1462_v29, %v1466_v30  ;;  %v1474_v34 = vld [vmem:[#allocation4 + $0x3e8] sm:$0xff] }
 0x3b8   :  { %v3272_v39 = vpack.c.bf16 %v1345_v33, %v1345_v33  ;;  %v1470_v33 = vld [vmem:[#allocation4 + $0x3c8] sm:$0xff] }
 0x3b9   :  { %v3270_v38 = vpack.c.bf16 %v1346_v35, %v1346_v35  ;;  %v2691_v35 = vcombine.low %v1462_v29, %v1466_v30  ;;  %v2700_v36 = vcombine.high %v1470_v33, %v1474_v34  ;;  %v2699_v41 = vcombine.low %v1470_v33, %v1474_v34 }
 0x3bb   :  { %2191 = vmatprep.mubr.bf16.mxu1 %v3270_v38 }
 0x3bc   :  { %2192 = vmatmul.mubr.bf16.vlgmr.msra.gmra.mrb[4].mxu1 %v3272_v39 }
 0x3bd   :  { %2201 = vmatpush1.bf16.msra.mxu1 %v2579_v24  ;;  %2232 = vmatprep.mubr.bf16.mxu1 %v3270_v38  ;;  %v2676_v24 = vcombine.high %v1446_v21, %v1450_v22 }
 0x3be   :  { %2202 = vmatprep.subr.bf16.mxu1 %v2588_v40  ;;  %v1355_v40 = vld [vmem:[#allocation4 + $0x30] sm:$0xff] }
 0x3bf   :  { %v2582_v42 = vcombine.high %v1351_v37, %v1355_v40  ;;  %v2581_v45 = vcombine.low %v1351_v37, %v1355_v40 }
 0x3c1   :  { %2203 = vmatpush1.bf16.msra.mxu1 %v2587_v43  ;;  %v1359_v43 = vld [vmem:[#allocation4 + $0x50] sm:$0xff] }
 0x3c2   :  { %2204 = vmatprep.subr.bf16.mxu1 %v2596_v44  ;;  %v1363_v44 = vld [vmem:[#allocation4 + $0x70] sm:$0xff] }
 0x3c3   :  { %v2590_v46 = vcombine.high %v1359_v43, %v1363_v44  ;;  %v2589_v49 = vcombine.low %v1359_v43, %v1363_v44 }
 0x3c5   :  { %2205 = vmatpush1.bf16.msra.mxu1 %v2595_v47  ;;  %v1367_v47 = vld [vmem:[#allocation4 + $0x90] sm:$0xff] }
 0x3c6   :  { %2206 = vmatprep.subr.bf16.mxu1 %v2604_v48  ;;  %v1371_v48 = vld [vmem:[#allocation4 + $0xb0] sm:$0xff] }
 0x3c7   :  { %v2598_v51 = vcombine.high %v1367_v47, %v1371_v48  ;;  %v2597_v55 = vcombine.low %v1367_v47, %v1371_v48 }
 0x3c9   :  { %2207 = vmatpush1.bf16.msra.mxu1 %v2603_v53  ;;  %v1375_v53 = vld [vmem:[#allocation4 + $0xd0] sm:$0xff] }
 0x3ca   :  { %2208 = vmatprep.subr.bf16.mxu1 %v2612_v54  ;;  %v1379_v54 = vld [vmem:[#allocation4 + $0xf0] sm:$0xff] }
 0x3cb   :  { %v2606_v56 = vcombine.high %v1375_v53, %v1379_v54  ;;  %v2605_v59 = vcombine.low %v1375_v53, %v1379_v54 }
 0x3cd   :  { %2209 = vmatpush1.bf16.msra.mxu1 %v2611_v57  ;;  %v1383_v57 = vld [vmem:[#allocation4 + $0x110] sm:$0xff] }
 0x3ce   :  { %2210 = vmatprep.subr.bf16.mxu1 %v2620_v58  ;;  %v1387_v58 = vld [vmem:[#allocation4 + $0x130] sm:$0xff] }
 0x3cf   :  { %v2614_v60 = vcombine.high %v1383_v57, %v1387_v58  ;;  %v2613_v63 = vcombine.low %v1383_v57, %v1387_v58 }
 0x3d1   :  { %2211 = vmatpush1.bf16.msra.mxu1 %v2619_v61  ;;  %v1391_v61 = vld [vmem:[#allocation4 + $0x150] sm:$0xff] }
 0x3d2   :  { %2212 = vmatprep.subr.bf16.mxu1 %v2628_v62  ;;  %v1395_v62 = vld [vmem:[#allocation4 + $0x170] sm:$0xff] }
 0x3d3   :  { %v2622_v0 = vcombine.high %v1391_v61, %v1395_v62  ;;  %v2621_v3 = vcombine.low %v1391_v61, %v1395_v62 }
 0x3d5   :  { %2213 = vmatpush1.bf16.msra.mxu1 %v2627_v1  ;;  %v1399_v1 = vld [vmem:[#allocation4 + $0x190] sm:$0xff] }
 0x3d6   :  { %2214 = vmatprep.subr.bf16.mxu1 %v2636_v2  ;;  %v1403_v2 = vld [vmem:[#allocation4 + $0x1b0] sm:$0xff] }
 0x3d7   :  { %v2630_v4 = vcombine.high %v1399_v1, %v1403_v2  ;;  %v2629_v7 = vcombine.low %v1399_v1, %v1403_v2 }
 0x3d9   :  { %2215 = vmatpush1.bf16.msra.mxu1 %v2635_v5  ;;  %v1407_v5 = vld [vmem:[#allocation4 + $0x1d0] sm:$0xff] }
 0x3da   :  { %2216 = vmatprep.subr.bf16.mxu1 %v2644_v6  ;;  %v1411_v6 = vld [vmem:[#allocation4 + $0x1f0] sm:$0xff] }
 0x3db   :  { %v2638_v8 = vcombine.high %v1407_v5, %v1411_v6  ;;  %v2637_v11 = vcombine.low %v1407_v5, %v1411_v6  ;;  %v1400_v6 = vld [vmem:[#allocation4 + $0x198] sm:$0xff] }
 0x3dd   :  { %2217 = vmatpush1.bf16.msra.mxu1 %v2643_v9  ;;  %v1415_v9 = vld [vmem:[#allocation4 + $0x210] sm:$0xff] }
 0x3de   :  { %2218 = vmatprep.subr.bf16.mxu1 %v2652_v10  ;;  %v1419_v10 = vld [vmem:[#allocation4 + $0x230] sm:$0xff] }
 0x3df   :  { %v2646_v12 = vcombine.high %v1415_v9, %v1419_v10  ;;  %v2645_v17 = vcombine.low %v1415_v9, %v1419_v10  ;;  %v1408_v10 = vld [vmem:[#allocation4 + $0x1d8] sm:$0xff] }
 0x3e1   :  { %2219 = vmatpush1.bf16.msra.mxu1 %v2651_v14  ;;  %v1423_v14 = vld [vmem:[#allocation4 + $0x250] sm:$0xff] }
 0x3e2   :  { %2220 = vmatprep.subr.bf16.mxu1 %v2660_v15  ;;  %v1427_v15 = vld [vmem:[#allocation4 + $0x270] sm:$0xff] }
 0x3e3   :  { %v2654_v18 = vcombine.high %v1423_v14, %v1427_v15  ;;  %v2653_v21 = vcombine.low %v1423_v14, %v1427_v15  ;;  %v1416_v15 = vld [vmem:[#allocation4 + $0x218] sm:$0xff] }
 0x3e5   :  { %2221 = vmatpush1.bf16.msra.mxu1 %v2659_v19  ;;  %v1431_v19 = vld [vmem:[#allocation4 + $0x290] sm:$0xff] }
 0x3e6   :  { %2222 = vmatprep.subr.bf16.mxu1 %v2668_v20  ;;  %v1435_v20 = vld [vmem:[#allocation4 + $0x2b0] sm:$0xff] }
 0x3e7   :  { %v2662_v22 = vcombine.high %v1431_v19, %v1435_v20  ;;  %v2661_v25 = vcombine.low %v1431_v19, %v1435_v20  ;;  %v1424_v20 = vld [vmem:[#allocation4 + $0x258] sm:$0xff] }
 0x3e9   :  { %2223 = vmatpush1.bf16.msra.mxu1 %v2667_v23  ;;  %v1439_v23 = vld [vmem:[#allocation4 + $0x2d0] sm:$0xff] }
 0x3ea   :  { %2224 = vmatprep.subr.bf16.mxu1 %v2676_v24  ;;  %v1443_v24 = vld [vmem:[#allocation4 + $0x2f0] sm:$0xff] }
 0x3eb   :  { %v2670_v26 = vcombine.high %v1439_v23, %v1443_v24  ;;  %v2669_v29 = vcombine.low %v1439_v23, %v1443_v24  ;;  %v1432_v24 = vld [vmem:[#allocation4 + $0x298] sm:$0xff] }
 0x3ed   :  { %2225 = vmatpush1.bf16.msra.mxu1 %v2675_v27  ;;  %v1447_v27 = vld [vmem:[#allocation4 + $0x310] sm:$0xff] }
 0x3ee   :  { %2226 = vmatprep.subr.bf16.mxu1 %v2684_v28  ;;  %v1451_v28 = vld [vmem:[#allocation4 + $0x330] sm:$0xff] }
 0x3ef   :  { %v2678_v30 = vcombine.high %v1447_v27, %v1451_v28  ;;  %v2677_v33 = vcombine.low %v1447_v27, %v1451_v28  ;;  %v1440_v28 = vld [vmem:[#allocation4 + $0x2d8] sm:$0xff] }
 0x3f1   :  { %2227 = vmatpush1.bf16.msra.mxu1 %v2683_v31  ;;  %v1455_v31 = vld [vmem:[#allocation4 + $0x350] sm:$0xff] }
 0x3f2   :  { %2228 = vmatprep.subr.bf16.mxu1 %v2692_v32  ;;  %v1459_v32 = vld [vmem:[#allocation4 + $0x370] sm:$0xff] }
 0x3f3   :  { %v2686_v34 = vcombine.high %v1455_v31, %v1459_v32  ;;  %v2685_v37 = vcombine.low %v1455_v31, %v1459_v32  ;;  %v1448_v32 = vld [vmem:[#allocation4 + $0x318] sm:$0xff] }
 0x3f5   :  { %2229 = vmatpush1.bf16.msra.mxu1 %v2691_v35  ;;  %v1463_v35 = vld [vmem:[#allocation4 + $0x390] sm:$0xff] }
 0x3f6   :  { %2230 = vmatprep.subr.bf16.mxu1 %v2700_v36  ;;  %v1467_v36 = vld [vmem:[#allocation4 + $0x3b0] sm:$0xff] }
 0x3f7   :  { %v2694_v40 = vcombine.high %v1463_v35, %v1467_v36  ;;  %v2693_v43 = vcombine.low %v1463_v35, %v1467_v36  ;;  %v1456_v36 = vld [vmem:[#allocation4 + $0x358] sm:$0xff] }
 0x3f9   :  { %2231 = vmatpush1.bf16.msra.mxu1 %v2699_v41  ;;  %v1471_v41 = vld [vmem:[#allocation4 + $0x3d0] sm:$0xff] }
 0x3fa   :  { %2241 = vmatprep.subr.bf16.mxu1 %v2582_v42  ;;  %v1475_v42 = vld [vmem:[#allocation4 + $0x3f0] sm:$0xff] }
 0x3fb   :  { %v2702_v44 = vcombine.high %v1471_v41, %v1475_v42  ;;  %v2701_v47 = vcombine.low %v1471_v41, %v1475_v42  ;;  %v1464_v42 = vld [vmem:[#allocation4 + $0x398] sm:$0xff] }
 0x3fc   :  { %2233 = vmatmul.mubr.bf16.vlgmr.msra.gmra.mrb[8].mxu1 %v3272_v39 }
 0x3fd   :  { %2242 = vmatpush1.bf16.msra.mxu1 %v2581_v45  ;;  %2273 = vmatprep.mubr.bf16.mxu1 %v3270_v38  ;;  %v1352_v45 = vld [vmem:[#allocation4 + $0x18] sm:$0xff] }
 0x3fe   :  { %2243 = vmatprep.subr.bf16.mxu1 %v2590_v46  ;;  %v1356_v46 = vld [vmem:[#allocation4 + $0x38] sm:$0xff] }
 0x3ff   :  { %v2584_v48 = vcombine.high %v1352_v45, %v1356_v46  ;;  %v2583_v53 = vcombine.low %v1352_v45, %v1356_v46  ;;  %v1472_v46 = vld [vmem:[#allocation4 + $0x3d8] sm:$0xff] }
 0x401   :  { %2244 = vmatpush1.bf16.msra.mxu1 %v2589_v49  ;;  %v1360_v49 = vld [vmem:[#allocation4 + $0x58] sm:$0xff] }
 0x402   :  { %2245 = vmatprep.subr.bf16.mxu1 %v2598_v51  ;;  %v1364_v51 = vld [vmem:[#allocation4 + $0x78] sm:$0xff] }
 0x403   :  { %v2592_v54 = vcombine.high %v1360_v49, %v1364_v51  ;;  %v2591_v57 = vcombine.low %v1360_v49, %v1364_v51 }
 0x405   :  { %2246 = vmatpush1.bf16.msra.mxu1 %v2597_v55  ;;  %v1368_v55 = vld [vmem:[#allocation4 + $0x98] sm:$0xff] }
 0x406   :  { %2247 = vmatprep.subr.bf16.mxu1 %v2606_v56  ;;  %v1372_v56 = vld [vmem:[#allocation4 + $0xb8] sm:$0xff] }
 0x407   :  { %v2600_v58 = vcombine.high %v1368_v55, %v1372_v56  ;;  %v2599_v61 = vcombine.low %v1368_v55, %v1372_v56 }
 0x409   :  { %2248 = vmatpush1.bf16.msra.mxu1 %v2605_v59  ;;  %v1376_v59 = vld [vmem:[#allocation4 + $0xd8] sm:$0xff] }
 0x40a   :  { %2249 = vmatprep.subr.bf16.mxu1 %v2614_v60  ;;  %v1380_v60 = vld [vmem:[#allocation4 + $0xf8] sm:$0xff] }
 0x40b   :  { %v2608_v62 = vcombine.high %v1376_v59, %v1380_v60  ;;  %v2607_v1 = vcombine.low %v1376_v59, %v1380_v60 }
 0x40d   :  { %2250 = vmatpush1.bf16.msra.mxu1 %v2613_v63  ;;  %v1384_v63 = vld [vmem:[#allocation4 + $0x118] sm:$0xff] }
 0x40e   :  { %2251 = vmatprep.subr.bf16.mxu1 %v2622_v0  ;;  %v1388_v0 = vld [vmem:[#allocation4 + $0x138] sm:$0xff] }
 0x40f   :  { %v2616_v2 = vcombine.high %v1384_v63, %v1388_v0  ;;  %v2615_v5 = vcombine.low %v1384_v63, %v1388_v0 }
 0x411   :  { %2252 = vmatpush1.bf16.msra.mxu1 %v2621_v3  ;;  %v1392_v3 = vld [vmem:[#allocation4 + $0x158] sm:$0xff] }
 0x412   :  { %2253 = vmatprep.subr.bf16.mxu1 %v2630_v4  ;;  %v1396_v4 = vld [vmem:[#allocation4 + $0x178] sm:$0xff] }
 0x415   :  { %2254 = vmatpush1.bf16.msra.mxu1 %v2629_v7  ;;  %v1404_v7 = vld [vmem:[#allocation4 + $0x1b8] sm:$0xff] }
 0x416   :  { %2255 = vmatprep.subr.bf16.mxu1 %v2638_v8  ;;  %v2623_v8 = vcombine.low %v1392_v3, %v1396_v4  ;;  %v2632_v9 = vcombine.high %v1400_v6, %v1404_v7 }
 0x419   :  { %2256 = vmatpush1.bf16.msra.mxu1 %v2637_v11  ;;  %v1412_v11 = vld [vmem:[#allocation4 + $0x1f8] sm:$0xff] }
 0x41a   :  { %2257 = vmatprep.subr.bf16.mxu1 %v2646_v12  ;;  %v2631_v12 = vcombine.low %v1400_v6, %v1404_v7  ;;  %v2640_v14 = vcombine.high %v1408_v10, %v1412_v11 }
 0x41d   :  { %2258 = vmatpush1.bf16.msra.mxu1 %v2645_v17  ;;  %v1420_v17 = vld [vmem:[#allocation4 + $0x238] sm:$0xff] }
 0x41e   :  { %2259 = vmatprep.subr.bf16.mxu1 %v2654_v18  ;;  %v2639_v18 = vcombine.low %v1408_v10, %v1412_v11  ;;  %v2648_v19 = vcombine.high %v1416_v15, %v1420_v17 }
 0x421   :  { %2260 = vmatpush1.bf16.msra.mxu1 %v2653_v21  ;;  %v1428_v21 = vld [vmem:[#allocation4 + $0x278] sm:$0xff] }
 0x422   :  { %2261 = vmatprep.subr.bf16.mxu1 %v2662_v22  ;;  %v2647_v22 = vcombine.low %v1416_v15, %v1420_v17  ;;  %v2656_v23 = vcombine.high %v1424_v20, %v1428_v21 }
 0x425   :  { %2262 = vmatpush1.bf16.msra.mxu1 %v2661_v25  ;;  %v1436_v25 = vld [vmem:[#allocation4 + $0x2b8] sm:$0xff] }
 0x426   :  { %2263 = vmatprep.subr.bf16.mxu1 %v2670_v26  ;;  %v2655_v26 = vcombine.low %v1424_v20, %v1428_v21  ;;  %v2664_v27 = vcombine.high %v1432_v24, %v1436_v25 }
 0x429   :  { %2264 = vmatpush1.bf16.msra.mxu1 %v2669_v29  ;;  %v1444_v29 = vld [vmem:[#allocation4 + $0x2f8] sm:$0xff] }
 0x42a   :  { %2265 = vmatprep.subr.bf16.mxu1 %v2678_v30  ;;  %v2663_v30 = vcombine.low %v1432_v24, %v1436_v25  ;;  %v2672_v31 = vcombine.high %v1440_v28, %v1444_v29 }
 0x42d   :  { %2266 = vmatpush1.bf16.msra.mxu1 %v2677_v33  ;;  %v1452_v33 = vld [vmem:[#allocation4 + $0x338] sm:$0xff] }
 0x42e   :  { %2267 = vmatprep.subr.bf16.mxu1 %v2686_v34  ;;  %v2671_v34 = vcombine.low %v1440_v28, %v1444_v29  ;;  %v2680_v35 = vcombine.high %v1448_v32, %v1452_v33  ;;  %v1501_v28 = vsub.s32 5, %v3141_v13 }
 0x431   :  { %2268 = vmatpush1.bf16.msra.mxu1 %v2685_v37  ;;  %v1460_v37 = vld [vmem:[#allocation4 + $0x378] sm:$0xff] }
 0x432   :  { %2269 = vmatprep.subr.bf16.mxu1 %v2694_v40  ;;  %v2679_v40 = vcombine.low %v1448_v32, %v1452_v33  ;;  %v2688_v41 = vcombine.high %v1456_v36, %v1460_v37 }
 0x435   :  { %2270 = vmatpush1.bf16.msra.mxu1 %v2693_v43  ;;  %v1468_v43 = vld [vmem:[#allocation4 + $0x3b8] sm:$0xff] }
 0x436   :  { %2271 = vmatprep.subr.bf16.mxu1 %v2702_v44  ;;  %v2687_v44 = vcombine.low %v1456_v36, %v1460_v37  ;;  %v2696_v45 = vcombine.high %v1464_v42, %v1468_v43 }
 0x439   :  { %2272 = vmatpush1.bf16.msra.mxu1 %v2701_v47  ;;  %v1476_v47 = vld [vmem:[#allocation4 + $0x3f8] sm:$0xff] }
 0x43a   :  { %2282 = vmatprep.subr.bf16.mxu1 %v2584_v48  ;;  %v2695_v48 = vcombine.low %v1464_v42, %v1468_v43  ;;  %v2704_v49 = vcombine.high %v1472_v46, %v1476_v47  ;;  %v2703_v51 = vcombine.low %v1472_v46, %v1476_v47 }
 0x43c   :  { %2274 = vmatmul.mubr.bf16.vlgmr.msra.gmra.mrb[12].mxu1 %v3272_v39 }
 0x43d   :  { %2283 = vmatpush1.bf16.msra.mxu1 %v2583_v53  ;;  %2314 = vmatprep.mubr.bf16.mxu1 %v3270_v38  ;;  %v2624_v38 = vcombine.high %v1392_v3, %v1396_v4  ;;  %v3285_v53 = vld [vmem:[%s3321_s8] sm:$0xff] }
 0x43e   :  { %2284 = vmatprep.subr.bf16.mxu1 %v2592_v54  ;;  %v1482_v54 = vrot.slane %v3285_v53, %v3240_v50  ;;  %v1486_v55 = vrot.slane %v3285_v53, %v3246_v52  ;;  %v1489_v52 = vsub.s32 2, %v3141_v13 }
 0x441   :  { %2285 = vmatpush1.bf16.msra.mxu1 %v2591_v57 }
 0x442   :  { %2286 = vmatprep.subr.bf16.mxu1 %v2600_v58 }
 0x445   :  { %2287 = vmatpush1.bf16.msra.mxu1 %v2599_v61 }
 0x446   :  { %2288 = vmatprep.subr.bf16.mxu1 %v2608_v62 }
 0x449   :  { %2289 = vmatpush1.bf16.msra.mxu1 %v2607_v1 }
 0x44a   :  { %2290 = vmatprep.subr.bf16.mxu1 %v2616_v2 }
 0x44d   :  { %2291 = vmatpush1.bf16.msra.mxu1 %v2615_v5  ;;  %v1493_v5 = vsub.s32 3, %v3141_v13 }
 0x44e   :  { %2292 = vmatprep.subr.bf16.mxu1 %v2624_v38  ;;  %v1490_v38 = vrot.slane %v3285_v53, %v1489_v52 }
 0x44f   :  { %v1494_v6 = vrot.slane %v3285_v53, %v1493_v5 }
 0x451   :  { %2293 = vmatpush1.bf16.msra.mxu1 %v2623_v8 }
 0x452   :  { %2294 = vmatprep.subr.bf16.mxu1 %v2632_v9 }
 0x455   :  { %2295 = vmatpush1.bf16.msra.mxu1 %v2631_v12 }
 0x456   :  { %2296 = vmatprep.subr.bf16.mxu1 %v2640_v14 }
 0x459   :  { %2297 = vmatpush1.bf16.msra.mxu1 %v2639_v18 }
 0x45a   :  { %2298 = vmatprep.subr.bf16.mxu1 %v2648_v19 }
 0x45d   :  { %2299 = vmatpush1.bf16.msra.mxu1 %v2647_v22 }
 0x45e   :  { %2300 = vmatprep.subr.bf16.mxu1 %v2656_v23 }
 0x461   :  { %2301 = vmatpush1.bf16.msra.mxu1 %v2655_v26 }
 0x462   :  { %2302 = vmatprep.subr.bf16.mxu1 %v2664_v27  ;;  %v1497_v27 = vsub.s32 4, %v3141_v13 }
 0x464   :  { %v1498_v29 = vrot.slane %v3285_v53, %v1497_v27 }
 0x465   :  { %2303 = vmatpush1.bf16.msra.mxu1 %v2663_v30  ;;  %v1502_v30 = vrot.slane %v3285_v53, %v1501_v28 }
 0x466   :  { %2304 = vmatprep.subr.bf16.mxu1 %v2672_v31 }
 0x469   :  { %2305 = vmatpush1.bf16.msra.mxu1 %v2671_v34 }
 0x46a   :  { %2306 = vmatprep.subr.bf16.mxu1 %v2680_v35 }
 0x46d   :  { %2307 = vmatpush1.bf16.msra.mxu1 %v2679_v40 }
 0x46e   :  { %2308 = vmatprep.subr.bf16.mxu1 %v2688_v41 }
 0x471   :  { %2309 = vmatpush1.bf16.msra.mxu1 %v2687_v44 }
 0x472   :  { %2310 = vmatprep.subr.bf16.mxu1 %v2696_v45 }
 0x475   :  { %2311 = vmatpush1.bf16.msra.mxu1 %v2695_v48  ;;  %v1505_v48 = vsub.s32 6, %v3141_v13 }
 0x476   :  { %2312 = vmatprep.subr.bf16.mxu1 %v2704_v49  ;;  %v1509_v49 = vsub.s32 7, %v3141_v13 }
 0x479   :  { %2313 = vmatpush1.bf16.msra.mxu1 %v2703_v51  ;;  %v1506_v51 = vrot.slane %v3285_v53, %v1505_v48 }
 0x47c   :  { %2315 = vmatmul.mubr.bf16.vlgmr.msra.gmra.mrb[16].mxu1 %v3272_v39 }
 0x48f   :  { %v2193_v56 = vpop.f32.mrb[4].mxu1 }
 0x490   :  { %v2194_v57 = vadd.f32 %v2193_v56, %v1482_v54  ;;  %v2195_v58 = vpop.f32.mrb[5].mxu1  ;;  %v1510_v54 = vrot.slane %v3285_v53, %v1509_v49 }
 0x491   :  { %v2196_v59 = vadd.f32 %v2195_v58, %v1486_v55  ;;  %v2197_v60 = vpop.f32.mrb[6].mxu1 }
 0x492   :  { %v2705_v61 = vmul.f32 -1.442695, %v2194_v57  ;;  %v2198_v62 = vpop.f32.mrb[7].mxu1 }
 0x493   :  { %v2706_v63 = vmul.f32 -1.442695, %v2196_v59 }
 0x494   :  { %2979 = vpow2.f32 %v2705_v61 }
 0x495   :  { %2981 = vpow2.f32 %v2706_v63 }
 0x49e   :  { %v2980_v39 = vpop.eup %2979 }
 0x49f   :  { %v2982_v0 = vpop.eup %2981  ;;  %v2347_v1 = vadd.f32 1.0, %v2980_v39 }
 0x4a0   :  { %v2348_v2 = vadd.f32 1.0, %v2982_v0 }
 0x4a1   :  { %2983 = vrcp.f32 %v2347_v1 }
 0x4a2   :  { %2985 = vrcp.f32 %v2348_v2 }
 0x4ab   :  { %v2984_v50 = vpop.eup %2983 }
 0x4ac   :  { %v2986_v3 = vpop.eup %2985 }
 0x4ad   :  { %v2379_v4 = vcombine.low %v2984_v50, %v2986_v3 }
 0x4af   :  { %v2387_v24 = vrot.slane %v2379_v4, %v3144_v16 }
 0x4cf   :  { %v2234_v7 = vpop.f32.mrb[8].mxu1 }
 0x4d0   :  { %v2235_v8 = vadd.f32 %v2234_v7, %v1490_v38  ;;  %v2236_v9 = vpop.f32.mrb[9].mxu1 }
 0x4d1   :  { %v2237_v10 = vadd.f32 %v2236_v9, %v1494_v6  ;;  %v2238_v11 = vpop.f32.mrb[10].mxu1 }
 0x4d2   :  { %v2707_v12 = vmul.f32 -1.442695, %v2235_v8  ;;  %v2239_v14 = vpop.f32.mrb[11].mxu1 }
 0x4d3   :  { %v2708_v15 = vmul.f32 -1.442695, %v2237_v10 }
 0x4d4   :  { %2987 = vpow2.f32 %v2707_v12 }
 0x4d5   :  { %2989 = vpow2.f32 %v2708_v15 }
 0x4de   :  { %v2988_v17 = vpop.eup %2987 }
 0x4df   :  { %v2990_v18 = vpop.eup %2989  ;;  %v2349_v19 = vadd.f32 1.0, %v2988_v17 }
 0x4e0   :  { %v2350_v20 = vadd.f32 1.0, %v2990_v18 }
 0x4e1   :  { %2991 = vrcp.f32 %v2349_v19 }
 0x4e2   :  { %2993 = vrcp.f32 %v2350_v20 }
 0x4eb   :  { %v2992_v21 = vpop.eup %2991 }
 0x4ec   :  { %v2994_v22 = vpop.eup %2993 }
 0x4ed   :  { %v2380_v23 = vcombine.low %v2992_v21, %v2994_v22 }
 0x4ef   :  { %v2394_v25 = vrot.slane %v2380_v23, %v3144_v16 }
 0x4f1   :  { %v2395_v26 = vcombine.low %v2387_v24, %v2394_v25 }
 0x4f3   :  { %2415 = vst [vmem:[%s3322_s9] sm:$0xff] %v2395_v26 }
 0x50f   :  { %v2275_v31 = vpop.f32.mrb[12].mxu1 }
 0x510   :  { %v2276_v32 = vadd.f32 %v2275_v31, %v1498_v29  ;;  %v2277_v33 = vpop.f32.mrb[13].mxu1 }
 0x511   :  { %v2278_v34 = vadd.f32 %v2277_v33, %v1502_v30  ;;  %v2279_v35 = vpop.f32.mrb[14].mxu1 }
 0x512   :  { %v2709_v36 = vmul.f32 -1.442695, %v2276_v32  ;;  %v2280_v37 = vpop.f32.mrb[15].mxu1 }
 0x513   :  { %v2710_v40 = vmul.f32 -1.442695, %v2278_v34 }
 0x514   :  { %2995 = vpow2.f32 %v2709_v36 }
 0x515   :  { %2997 = vpow2.f32 %v2710_v40 }
 0x51e   :  { %v2996_v41 = vpop.eup %2995 }
 0x51f   :  { %v2998_v42 = vpop.eup %2997  ;;  %v2351_v43 = vadd.f32 1.0, %v2996_v41 }
 0x520   :  { %v2352_v44 = vadd.f32 1.0, %v2998_v42 }
 0x521   :  { %2999 = vrcp.f32 %v2351_v43 }
 0x522   :  { %3001 = vrcp.f32 %v2352_v44 }
 0x52b   :  { %v3000_v45 = vpop.eup %2999 }
 0x52c   :  { %v3002_v46 = vpop.eup %3001 }
 0x52d   :  { %v2396_v47 = vcombine.low %v3000_v45, %v3002_v46 }
 0x52f   :  { %v2404_v53 = vrot.slane %v2396_v47, %v3144_v16 }
 0x54f   :  { %v2316_v55 = vpop.f32.mrb[16].mxu1 }
 0x550   :  { %v2317_v56 = vadd.f32 %v2316_v55, %v1506_v51  ;;  %v2318_v57 = vpop.f32.mrb[17].mxu1 }
 0x551   :  { %v2319_v58 = vadd.f32 %v2318_v57, %v1510_v54  ;;  %v2320_v59 = vpop.f32.mrb[18].mxu1 }
 0x552   :  { %v2711_v60 = vmul.f32 -1.442695, %v2317_v56  ;;  %v2321_v61 = vpop.f32.mrb[19].mxu1 }
 0x553   :  { %v2712_v62 = vmul.f32 -1.442695, %v2319_v58 }
 0x554   :  { %3003 = vpow2.f32 %v2711_v60 }
 0x555   :  { %3005 = vpow2.f32 %v2712_v62 }
 0x55e   :  { %v3004_v63 = vpop.eup %3003 }
 0x55f   :  { %v3006_v39 = vpop.eup %3005  ;;  %v2353_v0 = vadd.f32 1.0, %v3004_v63 }
 0x560   :  { %v2354_v1 = vadd.f32 1.0, %v3006_v39 }
 0x561   :  { %3007 = vrcp.f32 %v2353_v0 }
 0x562   :  { %3009 = vrcp.f32 %v2354_v1 }
 0x56b   :  { %v3008_v13 = vpop.eup %3007 }
 0x56c   :  { %v3010_v2 = vpop.eup %3009 }
 0x56d   :  { %v2397_v50 = vcombine.low %v3008_v13, %v3010_v2 }
 0x56f   :  { %v2411_v3 = vrot.slane %v2397_v50, %v3144_v16 }
 0x571   :  { %v2412_v4 = vcombine.low %v2404_v53, %v2411_v3 }
 0x573   :  { %2416 = vst [vmem:[%s3322_s9 + $0x8] sm:$0xff] %v2412_v4 }
 0x574   :  { %2421 = vsyncpa [#allocation3], 1 }
 0x575   :  { %2422 = vsyncpa [#allocation5], 1 }

</bundles_post_ra>
